<compile_context>
chip_gen: v7x
topology: tpu7x:2x2x1
jax: 0.10.0
libtpu: 0.0.40
codegen_flags: <defaults>
</compile_context>

<pallas_src>
import math

import jax
import jax.numpy as jnp
from jax.experimental import pallas as pl
from jax.experimental.pallas import tpu as pltpu


# ----------------------------------------------------------------------------
# Kernels
# ----------------------------------------------------------------------------
def _mlp_kernel_fused(x_ref, w1_ref, b1_ref, w2_ref, b2_ref, o_ref):
    """One (tm, D) row tile against the full, VMEM-resident weight set."""
    # First linear: (tm, D) @ (D, H) -> f32 accumulation on the MXU.
    h = jnp.dot(x_ref[...], w1_ref[...], preferred_element_type=jnp.float32)
    h = jnp.maximum(h + b1_ref[...].astype(jnp.float32), 0.0)  # ReLU in f32 (VPU)

    # TODO(synk): training-mode stochastic dropout via pltpu.prng_* if needed;
    # eval-mode dropout is the identity.

    # Second linear: (tm, H) @ (H, D).  Cast h down to the weight dtype so bf16
    # weights keep the bf16 MXU path; accumulate in f32.
    out = jnp.dot(h.astype(w2_ref.dtype), w2_ref[...],
                  preferred_element_type=jnp.float32)
    o_ref[...] = (out + b2_ref[...].astype(jnp.float32)).astype(o_ref.dtype)


def _mlp_kernel_tiled(x_ref, w1_ref, b1_ref, w2_ref, b2_ref, o_ref, acc_ref):
    """Fallback: one (tm, D) row tile x one th-wide slice of the hidden units.

    Grid = (row_tiles, hidden_tiles); the hidden axis is the reduction of the
    second linear, so partial products accumulate in f32 VMEM scratch and the
    output tile is written once, on the last hidden step.
    """
    j = pl.program_id(1)

    @pl.when(j == 0)
    def _init():
        acc_ref[...] = jnp.zeros_like(acc_ref)

    h = jnp.dot(x_ref[...], w1_ref[...], preferred_element_type=jnp.float32)
    h = jnp.maximum(h + b1_ref[...].astype(jnp.float32), 0.0)

    acc_ref[...] += jnp.dot(h.astype(w2_ref.dtype), w2_ref[...],
                            preferred_element_type=jnp.float32)

    @pl.when(j == pl.num_programs(1) - 1)
    def _finalize():
        o_ref[...] = (acc_ref[...] + b2_ref[...].astype(jnp.float32)
                      ).astype(o_ref.dtype)


# ----------------------------------------------------------------------------
# Wrapper
# ----------------------------------------------------------------------------
def _round_up(n, m):
    return ((n + m - 1) // m) * m


def _sublane_align(dtype):
    # Rows per packed sublane tile: f32 -> 8, bf16 -> 16, int8/fp8 -> 32.
    return max(8, 32 // jnp.dtype(dtype).itemsize)


def _vmem_capacity_bytes():
    try:
        return int(pltpu.get_tpu_info().vmem_capacity_bytes)
    except Exception:
        return 64 * 1024 * 1024  # conservative per-TC figure (v7x)


def mlp_forward(x, w1, b1, w2, b2, *, tile_rows=256):
    """x: (..., n_units). w1: (n_units, H). b1: (H,). w2: (H, n_units). b2: (n_units,).

    Weights are stored in "x @ w" layout (transposed relative to
    torch.nn.Linear's (out, in) storage).
    """
    *lead, D = x.shape
    H = w1.shape[1]
    assert w1.shape == (D, H) and b1.shape == (H,)
    assert w2.shape == (H, D) and b2.shape == (D,)
    rows = math.prod(lead) if lead else 1

    x2 = x.reshape(rows, D)

    # ---- Lane-dense feature dim: pad D to a multiple of 128. ----------------
    D_p = _round_up(D, 128)
    if D_p != D:
        x2 = jnp.pad(x2, ((0, 0), (0, D_p - D)))
        w1 = jnp.pad(w1, ((0, D_p - D), (0, 0)))
        w2 = jnp.pad(w2, ((0, 0), (0, D_p - D)))
        b2 = jnp.pad(b2, (0, D_p - D))

    # ---- Row tiling: large, dtype-aligned tiles; >=2 programs when possible
    # (keeps both v7x TensorCores busy on the "parallel" row axis). -----------
    row_align = _sublane_align(x.dtype)
    tm = min(tile_rows, _round_up(rows, row_align))
    if _round_up(rows, tm) == tm and rows >= 2 * row_align:
        tm = min(tm, _round_up(-(-rows // 2), row_align))
    rows_p = _round_up(rows, tm)
    if rows_p != rows:
        x2 = jnp.pad(x2, ((0, rows_p - rows), (0, 0)))
    n_row_tiles = rows_p // tm

    b1_2 = b1.reshape(1, H)
    b2_2 = b2.reshape(1, D_p)

    # ---- Per-generation VMEM planning. --------------------------------------
    x_isz = jnp.dtype(x.dtype).itemsize
    w_isz = jnp.dtype(w1.dtype).itemsize
    weight_bytes = (2 * D_p * H + H + D_p) * w_isz        # w1 + w2 + b1 + b2
    vmem_cap = _vmem_capacity_bytes()
    vmem_budget = int(0.45 * vmem_cap)                     # leave pipeline headroom
    vmem_limit = int(min(0.75 * vmem_cap, 100 * 2 ** 20))  # raise scoped default
    # Per-row-tile working set: double-buffered x & out tiles + f32 hidden h.
    tile_bytes = 4 * tm * D_p * x_isz + tm * H * 4

    flops = 4 * rows_p * D_p * H  # two matmuls, 2*M*N*K each

    if 2 * weight_bytes + tile_bytes <= vmem_budget:
        # ---- Single-pass path: weights DMA'd once, resident across row tiles.
        out = pl.pallas_call(
            _mlp_kernel_fused,
            out_shape=jax.ShapeDtypeStruct((rows_p, D_p), x.dtype),
            grid_spec=pltpu.PrefetchScalarGridSpec(
                num_scalar_prefetch=0,
                grid=(n_row_tiles,),
                in_specs=[
                    pl.BlockSpec((tm, D_p), lambda i: (i, 0)),   # x row tile
                    pl.BlockSpec((D_p, H), lambda i: (0, 0)),    # w1 (resident)
                    pl.BlockSpec((1, H), lambda i: (0, 0)),      # b1 (resident)
                    pl.BlockSpec((H, D_p), lambda i: (0, 0)),    # w2 (resident)
                    pl.BlockSpec((1, D_p), lambda i: (0, 0)),    # b2 (resident)
                ],
                out_specs=pl.BlockSpec((tm, D_p), lambda i: (i, 0)),
            ),
            compiler_params=pltpu.CompilerParams(
                dimension_semantics=("parallel",),
                vmem_limit_bytes=vmem_limit,
            ),
            cost_estimate=pl.CostEstimate(
                flops=flops, transcendentals=0,
                bytes_accessed=2 * rows_p * D_p * x_isz + weight_bytes),
        )(x2, w1, b1_2, w2, b2_2)
    else:
        # ---- Fallback: tile the hidden (reduction) axis; largest slice that
        # fits the budget, reduction axis last in the grid. --------------------
        th = H
        while th > 128 and (4 * D_p * th * w_isz) + tile_bytes > vmem_budget:
            th //= 2
        assert H % th == 0 and th % 128 == 0
        out = pl.pallas_call(
            _mlp_kernel_tiled,
            out_shape=jax.ShapeDtypeStruct((rows_p, D_p), x.dtype),
            grid_spec=pltpu.PrefetchScalarGridSpec(
                num_scalar_prefetch=0,
                grid=(n_row_tiles, H // th),
                in_specs=[
                    pl.BlockSpec((tm, D_p), lambda i, j: (i, 0)),   # x row tile
                    pl.BlockSpec((D_p, th), lambda i, j: (0, j)),   # w1 slice
                    pl.BlockSpec((1, th), lambda i, j: (0, j)),     # b1 slice
                    pl.BlockSpec((th, D_p), lambda i, j: (j, 0)),   # w2 slice
                    pl.BlockSpec((1, D_p), lambda i, j: (0, 0)),    # b2
                ],
                out_specs=pl.BlockSpec((tm, D_p), lambda i, j: (i, 0)),
                scratch_shapes=[pltpu.VMEM((tm, D_p), jnp.float32)],
            ),
            compiler_params=pltpu.CompilerParams(
                dimension_semantics=("parallel", "arbitrary"),
                vmem_limit_bytes=vmem_limit,
            ),
            cost_estimate=pl.CostEstimate(
                flops=flops, transcendentals=0,
                bytes_accessed=(2 * rows_p * D_p * x_isz
                                + n_row_tiles * weight_bytes)),
        )(x2, w1, b1_2, w2, b2_2)

    out = out[:rows, :D]
    return out.reshape(*lead, D)


def _reference(x, w1, b1, w2, b2):
    """Pure-JAX reference mirroring the PyTorch forward (eval-mode dropout)."""
    h = jnp.maximum(x @ w1 + b1, 0.0)
    return h @ w2 + b2


if __name__ == "__main__":
    key = jax.random.PRNGKey(0)
    B, S, n_units, hidden = 2, 8, 32, 2048  # hidden fixed at 2048 by the module
    kx, kw1, kb1, kw2, kb2 = jax.random.split(key, 5)

    x = jax.random.normal(kx, (B, S, n_units), dtype=jnp.float32)
    w1 = 0.02 * jax.random.normal(kw1, (n_units, hidden), dtype=jnp.float32)
    b1 = 0.01 * jax.random.normal(kb1, (hidden,), dtype=jnp.float32)
    w2 = 0.02 * jax.random.normal(kw2, (hidden, n_units), dtype=jnp.float32)
    b2 = 0.01 * jax.random.normal(kb2, (n_units,), dtype=jnp.float32)

    out = mlp_forward(x, w1, b1, w2, b2)
    out = jax.block_until_ready(out)

    ref = _reference(x, w1, b1, w2, b2)
    assert out.shape == (B, S, n_units)
    assert jnp.allclose(out, ref, atol=1e-4, rtol=1e-4), "mismatch vs reference"

    print("KERNEL_OK")
</pallas_src>

<mosaic_0001>
module attributes {stable_mosaic.version = 11 : i64} {
  func.func @_mlp_kernel_fused(%arg0: i32, %arg1: memref<8x128xf32, #tpu.memory_space<vmem>>, %arg2: memref<128x2048xf32, #tpu.memory_space<vmem>>, %arg3: memref<1x2048xf32, #tpu.memory_space<vmem>>, %arg4: memref<2048x128xf32, #tpu.memory_space<vmem>>, %arg5: memref<1x128xf32, #tpu.memory_space<vmem>>, %arg6: memref<8x128xf32, #tpu.memory_space<vmem>>) attributes {dimension_semantics = [#tpu.dimension_semantics<parallel>], iteration_bounds = array<i64: 2>, scalar_prefetch = 0 : i64, scratch_operands = 0 : i64, tpu.core_type = #tpu.core_type<tc>, window_params = [{transform_indices = @transform_0, window_bounds = array<i64: 8, 128>}, {pipeline_mode = #tpu.pipeline_mode<synchronous>, transform_indices = @transform_1, window_bounds = array<i64: 128, 2048>}, {pipeline_mode = #tpu.pipeline_mode<synchronous>, transform_indices = @transform_2, window_bounds = array<i64: 1, 2048>}, {pipeline_mode = #tpu.pipeline_mode<synchronous>, transform_indices = @transform_3, window_bounds = array<i64: 2048, 128>}, {pipeline_mode = #tpu.pipeline_mode<synchronous>, transform_indices = @transform_4, window_bounds = array<i64: 1, 128>}, {transform_indices = @transform_5, window_bounds = array<i64: 8, 128>}]} {
    %c0 = arith.constant 0 : index
    %c0_0 = arith.constant 0 : index
    %0 = vector.load %arg1[%c0, %c0_0] : memref<8x128xf32, #tpu.memory_space<vmem>>, vector<8x128xf32>
    %c0_1 = arith.constant 0 : index
    %c0_2 = arith.constant 0 : index
    %1 = vector.load %arg2[%c0_1, %c0_2] : memref<128x2048xf32, #tpu.memory_space<vmem>>, vector<128x2048xf32>
    %cst = arith.constant dense<0.000000e+00> : vector<8x2048xf32>
    %2 = tpu.matmul %0, %1, %cst {dimension_numbers = #tpu.dot_dimension_numbers<[1], [0], [0], [1], [0, 0, 1, 1], [], []>} : vector<8x128xf32>, vector<128x2048xf32>, vector<8x2048xf32> -> vector<8x2048xf32>
    %c0_3 = arith.constant 0 : index
    %c0_4 = arith.constant 0 : index
    %3 = vector.load %arg3[%c0_3, %c0_4] : memref<1x2048xf32, #tpu.memory_space<vmem>>, vector<1x2048xf32>
    %4 = vector.broadcast %3 : vector<1x2048xf32> to vector<8x2048xf32>
    %5 = arith.addf %2, %4 : vector<8x2048xf32>
    %cst_5 = arith.constant 0.000000e+00 : f32
    %6 = vector.broadcast %cst_5 : f32 to vector<8x2048xf32>
    %7 = arith.maximumf %5, %6 : vector<8x2048xf32>
    %c0_6 = arith.constant 0 : index
    %c0_7 = arith.constant 0 : index
    %8 = vector.load %arg4[%c0_6, %c0_7] : memref<2048x128xf32, #tpu.memory_space<vmem>>, vector<2048x128xf32>
    %cst_8 = arith.constant dense<0.000000e+00> : vector<8x128xf32>
    %9 = tpu.matmul %7, %8, %cst_8 {dimension_numbers = #tpu.dot_dimension_numbers<[1], [0], [0], [1], [0, 0, 1, 1], [], []>} : vector<8x2048xf32>, vector<2048x128xf32>, vector<8x128xf32> -> vector<8x128xf32>
    %c0_9 = arith.constant 0 : index
    %c0_10 = arith.constant 0 : index
    %10 = vector.load %arg5[%c0_9, %c0_10] : memref<1x128xf32, #tpu.memory_space<vmem>>, vector<1x128xf32>
    %11 = vector.broadcast %10 : vector<1x128xf32> to vector<8x128xf32>
    %12 = arith.addf %9, %11 : vector<8x128xf32>
    %c0_11 = arith.constant 0 : index
    %c0_12 = arith.constant 0 : index
    %13 = vector.load %arg6[%c0_11, %c0_12] : memref<8x128xf32, #tpu.memory_space<vmem>>, vector<8x128xf32>
    tpu.vector_store %arg6[%c0_11, %c0_12], %12 {strides = array<i32>} : memref<8x128xf32, #tpu.memory_space<vmem>>, vector<8x128xf32>,
    return
  }
  func.func @transform_0(%arg0: i32) -> (i32, i32) {
    %c0_i32 = arith.constant 0 : i32
    %c0_i32_0 = arith.constant 0 : i32
    return %arg0, %c0_i32 : i32, i32
  }
  func.func @transform_1(%arg0: i32) -> (i32, i32) {
    %c0_i32 = arith.constant 0 : i32
    %c0_i32_0 = arith.constant 0 : i32
    %c0_i32_1 = arith.constant 0 : i32
    return %c0_i32, %c0_i32_0 : i32, i32
  }
  func.func @transform_2(%arg0: i32) -> (i32, i32) {
    %c0_i32 = arith.constant 0 : i32
    %c0_i32_0 = arith.constant 0 : i32
    %c0_i32_1 = arith.constant 0 : i32
    return %c0_i32, %c0_i32_0 : i32, i32
  }
  func.func @transform_3(%arg0: i32) -> (i32, i32) {
    %c0_i32 = arith.constant 0 : i32
    %c0_i32_0 = arith.constant 0 : i32
    %c0_i32_1 = arith.constant 0 : i32
    return %c0_i32, %c0_i32_0 : i32, i32
  }
  func.func @transform_4(%arg0: i32) -> (i32, i32) {
    %c0_i32 = arith.constant 0 : i32
    %c0_i32_0 = arith.constant 0 : i32
    %c0_i32_1 = arith.constant 0 : i32
    return %c0_i32, %c0_i32_0 : i32, i32
  }
  func.func @transform_5(%arg0: i32) -> (i32, i32) {
    %c0_i32 = arith.constant 0 : i32
    %c0_i32_0 = arith.constant 0 : i32
    return %arg0, %c0_i32 : i32, i32
  }
}

</mosaic_0001>

<bundles_post_ra>
// kernel: tpu_custom_call.1
= control target key start
LH: loop header
LB: loop body
LE: loop exit
PB: predicated region body
PF: predicated region fallthrough
CT: control target
= control target key end

     0   :  { %10 = vsyncpa [#allocation3], 0  ;;  %s3612_s0 = inlined_call_operand.hbm [shape: f32[16,128], index: 0, kind: input, shape index: {}]   ;;  %s3613_s1 = inlined_call_operand.hbm [shape: f32[128,2048], index: 1, kind: input, shape index: {}]   ;;  %s3614_s2 = inlined_call_operand.hbm [shape: f32[1,2048], index: 2, kind: input, shape index: {}]   ;;  %s3615_s3 = inlined_call_operand.hbm [shape: f32[2048,128], index: 3, kind: input, shape index: {}]   ;;  %s3616_s4 = inlined_call_operand.vmem [shape: f32[1,128], index: 4, kind: input, shape index: {}]   ;;  %s3617_s5 = inlined_call_operand.hbm [shape: f32[16,128], index: 5, kind: output, shape index: {}]  }
   0x1   :  { %12 = vsyncpa [#allocation3 + $0x1], 0 }
   0x2   :  { %13 = vsyncpa [#allocation6], 0 }
   0x3   :  { %14 = vsyncpa [#allocation9], 0 }
   0x4   :  { %15 = vsyncpa [#allocation4], 0 }
   0x5   :  { %17 = vsyncpa [#allocation4 + $0x1], 0  ;;  %s3265_s18 = smov 0   ;;  %s3267_s19 = smov 0  }
   0x6   :  { %s3269_s20 = smov 0   ;;  %s3271_s21 = smov 0  }
   0x7 LB: > { %s3286_s22 = sadd.s32 4294967295, %s3224_s21   ;;  %s2144_s23 = sadd.s32 4294967294, %s3224_s21   ;;  %s3224_s21 = sphi %s3271_s21, %s3640_s21   ;;  %s3220_s20 = sphi %s3269_s20, %s3639_s20   ;;  %s3216_s19 = sphi %s3267_s19, %s3638_s19   ;;  %s3212_s18 = sphi %s3265_s18, %s3637_s18  }
   0x8   : > { %p43_p0 = scmp.ne.s32.totalorder %s3216_s19, %s3212_s18  ;;  %p3618_p1 = scmp.eq.s32.totalorder %s3286_s22, 0 }
   0x9   : > { %p157_p3 = scmp.eq.s32.totalorder %s2144_s23, 1  ;;  %p2145_p5 = scmp.ge.s32.totalorder %s3224_s21, 1 }
   0xa   : > { %p3295_p4 = por %p3618_p1, %p43_p0  ;;  %p164_p7 = scmp.lt.s32.totalorder %s3224_s21, 3 }
   0xb   : > { %p3300_p6 = por %p157_p3, %p43_p0  ;;  %s3226_s27 = smov [#allocation5]  }
   0xc   : > { %s3621_s24 = scalar_select %p3295_p4, 1, 0 }
   0xd   : > { %s3622_s25 = scalar_select %p3300_p6, 1, 0 }
   0xe   : > { %p3305_p8 = pnand %p2145_p5, %p164_p7  ;;  %s176_s28 = sshll.u32 %s3226_s27, 4  ;;  %s3309_s28 = int_to_ptr.vmem [resolvable:$true] %s176_s28 }
   0xf   : > { %s3227_s30 = smov [#allocation7]   ;;  %s3228_s7 = smov [#allocation8]  }
  0x10   : > { %s3623_s26 = scalar_select %p3305_p8, 1, 0 }
  0x11   : > { %p2971_p9 = pneg %p3305_p8  ;;  %s190_s6 = sshll.u32 %s3227_s30, 4  ;;  %s3320_s6 = int_to_ptr.vmem [resolvable:$true] %s190_s6 }
  0x12   : > { %s3322_s8 = sshll.u32 %s3228_s7, 4  ;;  %s3036_s11 = scalar_lea.hbm %s3613_s1, 32768  ;;  %s201_s8 = int_to_ptr.vmem [resolvable:$true] %s3322_s8 }
  0x13   : > { %p3316_p11 = pnand %p2971_p9, %p3618_p1  ;;  %p3037_p12 = scmp.ne.s32.totalorder %s3613_s1, %s3036_s11 }
  0x14   : > { %p3043_p5 = scmp.lt.u32.totalorder %s3036_s11, %s3613_s1 }
  0x15   : > { %p3332_p13 = pneg %p3316_p11 }
  0x17   : > { %p3039_p0 = pnand %p3332_p13, %p3037_p12 }
  0x19   : > { %p3040_p3 = pneg %p3039_p0 }
  0x1b   : > { %p3045_p7 = pnand %p3043_p5, %p3040_p3 }
  0x1d   : > { %3048 = shalt.err (!%p3045_p7)
}
  0x1e   : > { %s3049_s17 = scalar_lea.vmem %s3309_s28, 32768  ;;  %p3057_p2 = scmp.lt.s32.totalorder %s3309_s28, %s3309_s28 }
  0x1f   : > { %p3050_p9 = scmp.ne.s32.totalorder %s3309_s28, %s3049_s17  ;;  %p3058_p6 = scmp.lt.s32.totalorder %s3049_s17, %s3049_s17 }
  0x21   : > { %p3052_p10 = pnand %p3050_p9, %p3332_p13  ;;  %p3059_p12 = por %p3058_p6, %p3057_p2 }
  0x23   : > { %p3053_p1 = pneg %p3052_p10 }
  0x25   : > { %p3060_p0 = pnand %p3059_p12, %p3053_p1 }
  0x27   : > { %3063 = shalt.err (!%p3060_p0)
}
  0x28   : > { %s3229_s23 = smov 2048   ;;  %s3230_s27 = smov 128  }
  0x29   : > { %2974 = dma.hbm_to_vmem [thread:$0]  (!%p3316_p11), %s3613_s1, 32768, %s3309_s28, [#allocation6], %s3229_s23, %s3229_s23, %s3230_s27  }
  0x2a   : > { %s3064_s11 = scalar_lea.hbm %s3614_s2, 256 }
  0x2b   : > { %p3065_p1 = scmp.ne.s32.totalorder %s3614_s2, %s3064_s11  ;;  %p3071_p10 = scmp.lt.u32.totalorder %s3064_s11, %s3614_s2 }
  0x2d   : > { %p3067_p2 = pnand %p3065_p1, %p3332_p13 }
  0x2f   : > { %p3068_p6 = pneg %p3067_p2 }
  0x31   : > { %p3073_p3 = pnand %p3071_p10, %p3068_p6 }
  0x33   : > { %3076 = shalt.err (!%p3073_p3)
}
  0x34   : > { %s3077_s28 = scalar_lea.vmem %s3320_s6, 256  ;;  %p3085_p12 = scmp.lt.s32.totalorder %s3320_s6, %s3320_s6 }
  0x35   : > { %p3078_p5 = scmp.ne.s32.totalorder %s3320_s6, %s3077_s28  ;;  %p3086_p0 = scmp.lt.s32.totalorder %s3077_s28, %s3077_s28 }
  0x37   : > { %p3080_p7 = pnand %p3078_p5, %p3332_p13  ;;  %p3087_p1 = por %p3086_p0, %p3085_p12 }
  0x39   : > { %p3081_p9 = pneg %p3080_p7 }
  0x3b   : > { %p3088_p2 = pnand %p3087_p1, %p3081_p9 }
  0x3d   : > { %3091 = shalt.err (!%p3088_p2)
}
  0x3e   : > { %2977 = dma.hbm_to_vmem [thread:$0]  (!%p3316_p11), %s3614_s2, 256, %s3320_s6, [#allocation6]  }
  0x3f   : > { %s3092_s9 = scalar_lea.hbm %s3615_s3, 32768 }
  0x40   : > { %p3093_p6 = scmp.ne.s32.totalorder %s3615_s3, %s3092_s9  ;;  %p3099_p5 = scmp.lt.u32.totalorder %s3092_s9, %s3615_s3 }
  0x42   : > { %p3095_p10 = pnand %p3093_p6, %p3332_p13 }
  0x44   : > { %p3096_p3 = pneg %p3095_p10 }
  0x46   : > { %p3101_p7 = pnand %p3099_p5, %p3096_p3 }
  0x48   : > { %3104 = shalt.err (!%p3101_p7)
}
  0x49   : > { %s3105_s15 = scalar_lea.vmem %s201_s8, 32768  ;;  %p3113_p1 = scmp.lt.s32.totalorder %s201_s8, %s201_s8 }
  0x4a   : > { %p3106_p9 = scmp.ne.s32.totalorder %s201_s8, %s3105_s15  ;;  %p3114_p2 = scmp.lt.s32.totalorder %s3105_s15, %s3105_s15 }
  0x4c   : > { %p3108_p12 = pnand %p3106_p9, %p3332_p13  ;;  %p3115_p4 = por %p3114_p2, %p3113_p1 }
  0x4e   : > { %p3109_p0 = pneg %p3108_p12 }
  0x50   : > { %p3116_p8 = pnand %p3115_p4, %p3109_p0 }
  0x52   : > { %3119 = shalt.err (!%p3116_p8)
}
  0x53   : > { %s3231_s6 = smov 8   ;;  %s3399_s14 = sadd.s32 1, %s3224_s21  }
  0x54   : > { %2980 = dma.hbm_to_vmem [thread:$0]  (!%p3316_p11), %s3615_s3, 32768, %s201_s8, [#allocation9], %s3230_s27, %s3230_s27, %s3231_s6  }
  0x55   : > { %s27_s29 = ssub.s32 %s3224_s21, %s3399_s14  ;;  %s30_s17 = sadd.s32 1, %s3220_s20 }
  0x56   : > { %p28_p4 = scmp.eq.s32.totalorder %s27_s29, 0  ;;  %p37_p8 = scmp.ne.s32.totalorder %s3220_s20, %s3216_s19 }
  0x57   : > { %p38_p13 = scmp.eq.s32.totalorder %s3224_s21, 0  ;;  %p3626_p10 = scmp.eq.s32.totalorder %s3286_s22, 1 }
  0x58   : > { %s3408_s23 = scalar_select %p28_p4, %s3220_s20, %s30_s17  }
  0x59   : > { %p39_p6 = por %p38_p13, %p37_p8  ;;  %p3412_p3 = por %p3626_p10, %p37_p8 }
  0x5a   : > { %p2992_p5 = scmp.lt.s32.totalorder %s3224_s21, 2  ;;  %s217_s7 = sand.u32 1, %s3220_s20  }
  0x5b   : > { %s2150_s9 = sshll.u32 %s217_s7, 3  ;;  %s2151_s8 = sshll.u32 %s3224_s21, 7 }
  0x5c   : > { %s3422_s11 = scalar_lea.hbm %s3612_s0, %s2151_s8  ;;  %s221_s12 = scalar_lea.vmem [#allocation2], %s2150_s9 }
  0x5d   : > { %s228_s13 = sshll.u32 %s221_s12, 4  ;;  %p3426_p11 = pnand %p2992_p5, %p39_p6  ;;  %s3424_s13 = int_to_ptr.vmem [resolvable:$true] %s228_s13 }
  0x5e   : > { %s218_s6 = scalar_lea.sflag [#allocation3], %s217_s7  ;;  %s3120_s16 = scalar_lea.hbm %s3422_s11, 128 }
  0x5f   : > { %p3121_p7 = scmp.ne.s32.totalorder %s3422_s11, %s3120_s16  ;;  %p3122_p9 = pneg %p3426_p11 }
  0x60   : > { %s3125_s17 = scalar_lea.hbm %s3612_s0, 256  ;;  %p3126_p1 = scmp.lt.u32.totalorder %s3422_s11, %s3612_s0 }
  0x61   : > { %p3123_p12 = pnand %p3122_p9, %p3121_p7  ;;  %p3127_p2 = scmp.lt.u32.totalorder %s3125_s17, %s3120_s16 }
  0x62   : > { %p3129_p8 = scmp.lt.u32.totalorder %s3120_s16, %s3422_s11 }
  0x63   : > { %p3124_p0 = pneg %p3123_p12  ;;  %p3128_p4 = por %p3127_p2, %p3126_p1 }
  0x65   : > { %p3130_p13 = por %p3129_p8, %p3128_p4 }
  0x67   : > { %p3131_p6 = pnand %p3130_p13, %p3124_p0 }
  0x69   : > { %3134 = shalt.err (!%p3131_p6)
}
  0x6a   : > { %s3135_s7 = scalar_lea.vmem %s3424_s13, 128  ;;  %s3232_s27 = smov [#allocation2]  }
  0x6b   : > { %p3136_p10 = scmp.ne.s32.totalorder %s3424_s13, %s3135_s7  ;;  %s3140_s10 = sshll.u32 %s3232_s27, 4  ;;  %s3141_s10 = int_to_ptr.vmem [resolvable:$false] %s3140_s10 }
  0x6c   : > { %s3142_s12 = scalar_lea.vmem %s3141_s10, 256  ;;  %p3143_p12 = scmp.lt.s32.totalorder %s3424_s13, %s3141_s10 }
  0x6d   : > { %p3138_p5 = pnand %p3136_p10, %p3122_p9  ;;  %p3144_p1 = scmp.lt.s32.totalorder %s3142_s12, %s3135_s7 }
  0x6f   : > { %p3139_p7 = pneg %p3138_p5  ;;  %p3145_p2 = por %p3144_p1, %p3143_p12 }
  0x71   : > { %p3146_p4 = pnand %p3145_p2, %p3139_p7 }
  0x73   : > { %3149 = shalt.err (!%p3146_p4)
}
  0x74   : > { %2984 = dma.hbm_to_vmem [thread:$0]  (!%p3426_p11), %s3422_s11, 128, %s3424_s13, %s218_s6  }
  0x75   : > { %p3629_p0 = scmp.ne.s32.totalorder %s3623_s26, 0 }
  0x76   : > { %s3458_s16 = sand.u32 (!%p3629_p0), 1, %s3216_s19   ;;  %p3630_p9 = scmp.ne.s32.totalorder (!%p3629_p0), %s3621_s24, 0 }
  0x77   : > { %237 = sbr.rel (%p3629_p0) target bundleno = 717 (0x2cd), region = 40  ;;  %s2153_s28 = sshll.u32 (!%p3629_p0), %s3458_s16, 3 }
  0x78   : > { %s240_s29 = scalar_lea.sflag (!%p3629_p0), [#allocation3], %s3458_s16  ;;  %s3464_s17 = scalar_lea.vmem (!%p3629_p0), [#allocation2], %s2153_s28 }
  0x7e   : > { %3195 = dma.done.wait (%p3630_p9), %s240_s29, 128  }
  0x7f   : > { %3197 = vsyncadd (%p3630_p9), %s240_s29, 4294967168  ;;  %p3631_p11 = scmp.eq.s32.totalorder %s3286_s22, 0 }
  0x81   : > { %3199 = dma.done.wait (%p3631_p11), [#allocation6], 33024   ;;  %p3632_p8 = pmov %p3631_p11 }
  0x83   : > { %3201 = vsyncadd (%p3632_p8), [#allocation6], 4294934272  ;;  %p3633_p13 = pmov %p3632_p8 }
  0x84   : > { %p3634_p6 = pmov %p3632_p8 }
  0x85   : > { %3203 = dma.done.wait (%p3633_p13), [#allocation9], 32768  }
  0x86   : > { %3205 = vsyncadd (%p3634_p6), [#allocation9], 4294934528  ;;  %v3233_v0 = vmov 0.0   ;;  %v284_v1 = vld [vmem:[#allocation5 + $0x8] sm:$0xff]  ;;  %v286_v3 = vld [vmem:[#allocation5 + $0x18] sm:$0xff]  ;;  %s2160_s11 = sshll.u32 %s3286_s22, 7 }
  0x87   : > { %687 = vmatprep.mubr.f32.mxu0 %v3233_v0  ;;  %758 = vmatprep.mubr.f32.mxu1 %v3233_v0  ;;  %v300_v2 = vld [vmem:[#allocation5 + $0x88] sm:$0xff]  ;;  %v302_v5 = vld [vmem:[#allocation5 + $0x98] sm:$0xff]  ;;  %v283_v6 = vld [vmem:[#allocation5] sm:$0xff]  ;;  %s281_s13 = scalar_lea.vmem [#allocation10], %s2153_s28  ;;  %s3568_s8 = scalar_lea.hbm %s3617_s5, %s2160_s11 }
  0x88   : > { %v2443_v4 = vpack.c.bf16 %v300_v2, %v284_v1  ;;  %v299_v7 = vld [vmem:[#allocation5 + $0x80] sm:$0xff]  ;;  %v2475_v8 = vpack.c.bf16 %v302_v5, %v286_v3  ;;  %v285_v10 = vld [vmem:[#allocation5 + $0x10] sm:$0xff]  ;;  %v316_v12 = vld [vmem:[#allocation5 + $0x108] sm:$0xff]  ;;  %s2045_s15 = sshll.u32 %s281_s13, 4  ;;  %s2032_s7 = scalar_lea.sflag [#allocation4], %s3458_s16  ;;  %s3570_s15 = int_to_ptr.vmem [resolvable:$true] %s2045_s15 }
  0x89   : > { %v2445_v9 = vpack.c.bf16 %v299_v7, %v283_v6  ;;  %v301_v11 = vld [vmem:[#allocation5 + $0x90] sm:$0xff]  ;;  %v332_v14 = vld [vmem:[#allocation5 + $0x188] sm:$0xff]  ;;  %v318_v15 = vld [vmem:[#allocation5 + $0x118] sm:$0xff]  ;;  %s3150_s27 = scalar_lea.vmem %s3570_s15, 128  ;;  %s3234_s22 = smov [#allocation10]  }
  0x8a   : > { %2444 = vmatprep.subr.bf16.mxu0 %v2443_v4  ;;  %v2477_v13 = vpack.c.bf16 %v301_v11, %v285_v10  ;;  %v334_v16 = vld [vmem:[#allocation5 + $0x198] sm:$0xff]  ;;  %2476 = vmatprep.subr.bf16.mxu1 %v2475_v8  ;;  %v2447_v17 = vpack.c.bf16 %v332_v14, %v316_v12  ;;  %v315_v19 = vld [vmem:[#allocation5 + $0x100] sm:$0xff]  ;;  %v317_v21 = vld [vmem:[#allocation5 + $0x110] sm:$0xff]  ;;  %p3151_p10 = scmp.ne.s32.totalorder %s3570_s15, %s3150_s27  ;;  %s3154_s10 = sshll.u32 %s3234_s22, 4  ;;  %s3155_s10 = int_to_ptr.vmem [resolvable:$false] %s3154_s10 }
  0x8b   : > { %2446 = vmatpush1.bf16.msra.mxu0 %v2445_v9  ;;  %v2479_v18 = vpack.c.bf16 %v334_v16, %v318_v15  ;;  %v331_v20 = vld [vmem:[#allocation5 + $0x180] sm:$0xff]  ;;  %v333_v23 = vld [vmem:[#allocation5 + $0x190] sm:$0xff]  ;;  %v348_v24 = vld [vmem:[#allocation5 + $0x208] sm:$0xff]  ;;  %s3156_s12 = scalar_lea.vmem %s3155_s10, 256  ;;  %p3157_p12 = scmp.lt.s32.totalorder %s3570_s15, %s3155_s10 }
  0x8c   : > { %2478 = vmatpush1.bf16.msra.mxu1 %v2477_v13  ;;  %v2449_v22 = vpack.c.bf16 %v331_v20, %v315_v19  ;;  %v364_v25 = vld [vmem:[#allocation5 + $0x288] sm:$0xff]  ;;  %2448 = vmatprep.subr.bf16.mxu0 %v2447_v17  ;;  %v2481_v26 = vpack.c.bf16 %v333_v23, %v317_v21  ;;  %v350_v28 = vld [vmem:[#allocation5 + $0x218] sm:$0xff]  ;;  %v347_v30 = vld [vmem:[#allocation5 + $0x200] sm:$0xff]  ;;  %p3152_p5 = pnand %p3151_p10, %p3412_p3  ;;  %p3158_p1 = scmp.lt.s32.totalorder %s3156_s12, %s3150_s27 }
  0x8d   : > { %2480 = vmatprep.subr.bf16.mxu1 %v2479_v18  ;;  %v2451_v27 = vpack.c.bf16 %v364_v25, %v348_v24  ;;  %v366_v29 = vld [vmem:[#allocation5 + $0x298] sm:$0xff]  ;;  %v363_v32 = vld [vmem:[#allocation5 + $0x280] sm:$0xff]  ;;  %v349_v33 = vld [vmem:[#allocation5 + $0x210] sm:$0xff] }
  0x8e   : > { %v2483_v31 = vpack.c.bf16 %v366_v29, %v350_v28  ;;  %v365_v34 = vld [vmem:[#allocation5 + $0x290] sm:$0xff]  ;;  %v2453_v35 = vpack.c.bf16 %v363_v32, %v347_v30  ;;  %v380_v36 = vld [vmem:[#allocation5 + $0x308] sm:$0xff]  ;;  %v382_v38 = vld [vmem:[#allocation5 + $0x318] sm:$0xff]  ;;  %p3153_p7 = pneg %p3152_p5  ;;  %p3159_p2 = por %p3158_p1, %p3157_p12 }
  0x8f   : > { %2450 = vmatpush1.bf16.msra.mxu0 %v2449_v22  ;;  %v396_v37 = vld [vmem:[#allocation5 + $0x388] sm:$0xff]  ;;  %v2485_v39 = vpack.c.bf16 %v365_v34, %v349_v33  ;;  %v398_v41 = vld [vmem:[#allocation5 + $0x398] sm:$0xff]  ;;  %v379_v42 = vld [vmem:[#allocation5 + $0x300] sm:$0xff] }
  0x90   : > { %2482 = vmatpush1.bf16.msra.mxu1 %v2481_v26  ;;  %2452 = vmatprep.subr.bf16.mxu0 %v2451_v27  ;;  %v2455_v40 = vpack.c.bf16 %v396_v37, %v380_v36  ;;  %v395_v43 = vld [vmem:[#allocation5 + $0x380] sm:$0xff]  ;;  %v2487_v44 = vpack.c.bf16 %v398_v41, %v382_v38  ;;  %v381_v45 = vld [vmem:[#allocation5 + $0x310] sm:$0xff]  ;;  %v412_v47 = vld [vmem:[#allocation5 + $0x408] sm:$0xff]  ;;  %p3160_p4 = pnand %p3159_p2, %p3153_p7 }
  0x91   : > { %2484 = vmatprep.subr.bf16.mxu1 %v2483_v31  ;;  %v397_v46 = vld [vmem:[#allocation5 + $0x390] sm:$0xff]  ;;  %v428_v48 = vld [vmem:[#allocation5 + $0x488] sm:$0xff]  ;;  %v414_v49 = vld [vmem:[#allocation5 + $0x418] sm:$0xff]  ;;  %v2457_v51 = vpack.c.bf16 %v395_v43, %v379_v42 }
  0x92   : > { %v430_v50 = vld [vmem:[#allocation5 + $0x498] sm:$0xff]  ;;  %v2489_v52 = vpack.c.bf16 %v397_v46, %v381_v45  ;;  %v2459_v53 = vpack.c.bf16 %v428_v48, %v412_v47  ;;  %v411_v54 = vld [vmem:[#allocation5 + $0x400] sm:$0xff]  ;;  %v413_v56 = vld [vmem:[#allocation5 + $0x410] sm:$0xff] }
  0x93   : > { %2454 = vmatpush1.bf16.msra.mxu0 %v2453_v35  ;;  %v427_v55 = vld [vmem:[#allocation5 + $0x480] sm:$0xff]  ;;  %v2491_v57 = vpack.c.bf16 %v430_v50, %v414_v49  ;;  %v429_v58 = vld [vmem:[#allocation5 + $0x490] sm:$0xff]  ;;  %v444_v59 = vld [vmem:[#allocation5 + $0x508] sm:$0xff] }
  0x94   : > { %2486 = vmatpush1.bf16.msra.mxu1 %v2485_v39  ;;  %2456 = vmatprep.subr.bf16.mxu0 %v2455_v40  ;;  %v460_v60 = vld [vmem:[#allocation5 + $0x588] sm:$0xff]  ;;  %v446_v61 = vld [vmem:[#allocation5 + $0x518] sm:$0xff]  ;;  %v2461_v63 = vpack.c.bf16 %v427_v55, %v411_v54  ;;  %v2493_v1 = vpack.c.bf16 %v429_v58, %v413_v56  ;;  %v443_v3 = vld [vmem:[#allocation5 + $0x500] sm:$0xff] }
  0x95   : > { %2488 = vmatprep.subr.bf16.mxu1 %v2487_v44  ;;  %v462_v62 = vld [vmem:[#allocation5 + $0x598] sm:$0xff]  ;;  %v2463_v2 = vpack.c.bf16 %v460_v60, %v444_v59  ;;  %v459_v4 = vld [vmem:[#allocation5 + $0x580] sm:$0xff]  ;;  %v445_v5 = vld [vmem:[#allocation5 + $0x510] sm:$0xff] }
  0x96   : > { %v2495_v6 = vpack.c.bf16 %v462_v62, %v446_v61  ;;  %v461_v7 = vld [vmem:[#allocation5 + $0x590] sm:$0xff]  ;;  %v476_v8 = vld [vmem:[#allocation5 + $0x608] sm:$0xff]  ;;  %v478_v10 = vld [vmem:[#allocation5 + $0x618] sm:$0xff]  ;;  %v2465_v12 = vpack.c.bf16 %v459_v4, %v443_v3 }
  0x97   : > { %2458 = vmatpush1.bf16.msra.mxu0 %v2457_v51  ;;  %v492_v9 = vld [vmem:[#allocation5 + $0x688] sm:$0xff]  ;;  %v494_v11 = vld [vmem:[#allocation5 + $0x698] sm:$0xff]  ;;  %v2497_v13 = vpack.c.bf16 %v461_v7, %v445_v5  ;;  %v475_v15 = vld [vmem:[#allocation5 + $0x600] sm:$0xff] }
  0x98   : > { %2490 = vmatpush1.bf16.msra.mxu1 %v2489_v52  ;;  %2460 = vmatprep.subr.bf16.mxu0 %v2459_v53  ;;  %v2467_v14 = vpack.c.bf16 %v492_v9, %v476_v8  ;;  %v491_v16 = vld [vmem:[#allocation5 + $0x680] sm:$0xff]  ;;  %v477_v17 = vld [vmem:[#allocation5 + $0x610] sm:$0xff]  ;;  %v2499_v18 = vpack.c.bf16 %v494_v11, %v478_v10  ;;  %v508_v20 = vld [vmem:[#allocation5 + $0x708] sm:$0xff] }
  0x99   : > { %2492 = vmatprep.subr.bf16.mxu1 %v2491_v57  ;;  %v493_v19 = vld [vmem:[#allocation5 + $0x690] sm:$0xff]  ;;  %v524_v21 = vld [vmem:[#allocation5 + $0x788] sm:$0xff]  ;;  %v510_v22 = vld [vmem:[#allocation5 + $0x718] sm:$0xff]  ;;  %v2469_v24 = vpack.c.bf16 %v491_v16, %v475_v15 }
  0x9a   : > { %v526_v23 = vld [vmem:[#allocation5 + $0x798] sm:$0xff]  ;;  %v2501_v25 = vpack.c.bf16 %v493_v19, %v477_v17  ;;  %v2471_v26 = vpack.c.bf16 %v524_v21, %v508_v20  ;;  %v507_v27 = vld [vmem:[#allocation5 + $0x700] sm:$0xff]  ;;  %v509_v29 = vld [vmem:[#allocation5 + $0x710] sm:$0xff] }
  0x9b   : > { %2462 = vmatpush1.bf16.msra.mxu0 %v2461_v63  ;;  %v523_v28 = vld [vmem:[#allocation5 + $0x780] sm:$0xff]  ;;  %v2503_v30 = vpack.c.bf16 %v526_v23, %v510_v22  ;;  %v525_v31 = vld [vmem:[#allocation5 + $0x790] sm:$0xff]  ;;  %v288_v32 = vld [vmem:[#allocation5 + $0x28] sm:$0xff] }
  0x9c   : > { %2494 = vmatpush1.bf16.msra.mxu1 %v2493_v1  ;;  %2464 = vmatprep.subr.bf16.mxu0 %v2463_v2  ;;  %v304_v33 = vld [vmem:[#allocation5 + $0xa8] sm:$0xff]  ;;  %v290_v34 = vld [vmem:[#allocation5 + $0x38] sm:$0xff]  ;;  %v2473_v36 = vpack.c.bf16 %v523_v28, %v507_v27  ;;  %v2505_v37 = vpack.c.bf16 %v525_v31, %v509_v29  ;;  %v287_v39 = vld [vmem:[#allocation5 + $0x20] sm:$0xff] }
  0x9d   : > { %2496 = vmatprep.subr.bf16.mxu1 %v2495_v6  ;;  %v306_v35 = vld [vmem:[#allocation5 + $0xb8] sm:$0xff]  ;;  %v2507_v38 = vpack.c.bf16 %v304_v33, %v288_v32  ;;  %v303_v40 = vld [vmem:[#allocation5 + $0xa0] sm:$0xff]  ;;  %v289_v41 = vld [vmem:[#allocation5 + $0x30] sm:$0xff] }
  0x9e   : > { %v2539_v42 = vpack.c.bf16 %v306_v35, %v290_v34  ;;  %v305_v43 = vld [vmem:[#allocation5 + $0xb0] sm:$0xff]  ;;  %v320_v44 = vld [vmem:[#allocation5 + $0x128] sm:$0xff]  ;;  %v322_v46 = vld [vmem:[#allocation5 + $0x138] sm:$0xff]  ;;  %v2509_v49 = vpack.c.bf16 %v303_v40, %v287_v39 }
  0x9f   : > { %2466 = vmatpush1.bf16.msra.mxu0 %v2465_v12  ;;  %v336_v45 = vld [vmem:[#allocation5 + $0x1a8] sm:$0xff]  ;;  %v338_v47 = vld [vmem:[#allocation5 + $0x1b8] sm:$0xff]  ;;  %v2541_v50 = vpack.c.bf16 %v305_v43, %v289_v41  ;;  %v319_v52 = vld [vmem:[#allocation5 + $0x120] sm:$0xff] }
  0xa0   : > { %2498 = vmatpush1.bf16.msra.mxu1 %v2497_v13  ;;  %2468 = vmatprep.subr.bf16.mxu0 %v2467_v14  ;;  %v3481_v48 = vld [vmem:[%s3464_s17] sm:$0xff]  ;;  %v2511_v51 = vpack.c.bf16 %v336_v45, %v320_v44  ;;  %v335_v53 = vld [vmem:[#allocation5 + $0x1a0] sm:$0xff]  ;;  %v2543_v55 = vpack.c.bf16 %v338_v47, %v322_v46  ;;  %v352_v57 = vld [vmem:[#allocation5 + $0x228] sm:$0xff] }
  0xa1   : > { %2500 = vmatprep.subr.bf16.mxu1 %v2499_v18  ;;  %v321_v54 = vld [vmem:[#allocation5 + $0x130] sm:$0xff]  ;;  %v368_v58 = vld [vmem:[#allocation5 + $0x2a8] sm:$0xff]  ;;  %v354_v59 = vld [vmem:[#allocation5 + $0x238] sm:$0xff]  ;;  %v2513_v61 = vpack.c.bf16 %v335_v53, %v319_v52 }
  0xa2   : > { %v337_v56 = vld [vmem:[#allocation5 + $0x1b0] sm:$0xff]  ;;  %v370_v60 = vld [vmem:[#allocation5 + $0x2b8] sm:$0xff]  ;;  %v2515_v63 = vpack.c.bf16 %v368_v58, %v352_v57  ;;  %v351_v1 = vld [vmem:[#allocation5 + $0x220] sm:$0xff] }
  0xa3   : > { %2470 = vmatpush1.bf16.msra.mxu0 %v2469_v24  ;;  %v2545_v62 = vpack.c.bf16 %v337_v56, %v321_v54  ;;  %v367_v2 = vld [vmem:[#allocation5 + $0x2a0] sm:$0xff]  ;;  %v353_v3 = vld [vmem:[#allocation5 + $0x230] sm:$0xff]  ;;  %v2547_v4 = vpack.c.bf16 %v370_v60, %v354_v59  ;;  %v384_v6 = vld [vmem:[#allocation5 + $0x328] sm:$0xff] }
  0xa4   : > { %2502 = vmatpush1.bf16.msra.mxu1 %v2501_v25  ;;  %2472 = vmatprep.subr.bf16.mxu0 %v2471_v26  ;;  %v369_v5 = vld [vmem:[#allocation5 + $0x2b0] sm:$0xff]  ;;  %v400_v7 = vld [vmem:[#allocation5 + $0x3a8] sm:$0xff]  ;;  %v386_v8 = vld [vmem:[#allocation5 + $0x338] sm:$0xff]  ;;  %v2517_v10 = vpack.c.bf16 %v367_v2, %v351_v1 }
  0xa5   : > { %2504 = vmatprep.subr.bf16.mxu1 %v2503_v30  ;;  %v402_v9 = vld [vmem:[#allocation5 + $0x3b8] sm:$0xff]  ;;  %v2549_v11 = vpack.c.bf16 %v369_v5, %v353_v3  ;;  %v2519_v12 = vpack.c.bf16 %v400_v7, %v384_v6  ;;  %v383_v13 = vld [vmem:[#allocation5 + $0x320] sm:$0xff]  ;;  %v385_v15 = vld [vmem:[#allocation5 + $0x330] sm:$0xff] }
  0xa6   : > { %v399_v14 = vld [vmem:[#allocation5 + $0x3a0] sm:$0xff]  ;;  %v2551_v16 = vpack.c.bf16 %v402_v9, %v386_v8  ;;  %v401_v17 = vld [vmem:[#allocation5 + $0x3b0] sm:$0xff]  ;;  %v416_v18 = vld [vmem:[#allocation5 + $0x428] sm:$0xff] }
  0xa7   : > { %2474 = vmatpush1.bf16.msra.mxu0 %v2473_v36  ;;  %v432_v19 = vld [vmem:[#allocation5 + $0x4a8] sm:$0xff]  ;;  %v418_v20 = vld [vmem:[#allocation5 + $0x438] sm:$0xff]  ;;  %v2521_v22 = vpack.c.bf16 %v399_v14, %v383_v13  ;;  %v2553_v23 = vpack.c.bf16 %v401_v17, %v385_v15  ;;  %v415_v25 = vld [vmem:[#allocation5 + $0x420] sm:$0xff] }
  0xa8   : > { %2506 = vmatpush1.bf16.msra.mxu1 %v2505_v37  ;;  %2508 = vmatprep.subr.bf16.mxu0 %v2507_v38  ;;  %v434_v21 = vld [vmem:[#allocation5 + $0x4b8] sm:$0xff]  ;;  %v2523_v24 = vpack.c.bf16 %v432_v19, %v416_v18  ;;  %v431_v26 = vld [vmem:[#allocation5 + $0x4a0] sm:$0xff]  ;;  %v417_v27 = vld [vmem:[#allocation5 + $0x430] sm:$0xff] }
  0xa9   : > { %2540 = vmatprep.subr.bf16.mxu1 %v2539_v42  ;;  %v2555_v28 = vpack.c.bf16 %v434_v21, %v418_v20  ;;  %v433_v29 = vld [vmem:[#allocation5 + $0x4b0] sm:$0xff]  ;;  %v448_v30 = vld [vmem:[#allocation5 + $0x528] sm:$0xff]  ;;  %v450_v32 = vld [vmem:[#allocation5 + $0x538] sm:$0xff]  ;;  %v2525_v34 = vpack.c.bf16 %v431_v26, %v415_v25 }
  0xaa   : > { %688 = vmatmul.mubr.f32.vlgmr.msra.gmra.mrb[0].mxu0 %v3481_v48  ;;  %v464_v31 = vld [vmem:[#allocation5 + $0x5a8] sm:$0xff]  ;;  %v466_v33 = vld [vmem:[#allocation5 + $0x5b8] sm:$0xff]  ;;  %v2557_v35 = vpack.c.bf16 %v433_v29, %v417_v27  ;;  %v447_v37 = vld [vmem:[#allocation5 + $0x520] sm:$0xff] }
  0xab   : > { %759 = vmatmul.mubr.f32.vlgmr.msra.gmra.mrb[0].mxu1 %v3481_v48  ;;  %2510 = vmatpush1.bf16.msra.mxu0 %v2509_v49  ;;  %v2527_v36 = vpack.c.bf16 %v464_v31, %v448_v30  ;;  %v463_v38 = vld [vmem:[#allocation5 + $0x5a0] sm:$0xff]  ;;  %v449_v39 = vld [vmem:[#allocation5 + $0x530] sm:$0xff]  ;;  %v2559_v40 = vpack.c.bf16 %v466_v33, %v450_v32  ;;  %v480_v42 = vld [vmem:[#allocation5 + $0x628] sm:$0xff] }
  0xac   : > { %2542 = vmatpush1.bf16.msra.mxu1 %v2541_v50  ;;  %2512 = vmatprep.subr.bf16.mxu0 %v2511_v51  ;;  %v465_v41 = vld [vmem:[#allocation5 + $0x5b0] sm:$0xff]  ;;  %v496_v43 = vld [vmem:[#allocation5 + $0x6a8] sm:$0xff]  ;;  %v482_v44 = vld [vmem:[#allocation5 + $0x638] sm:$0xff]  ;;  %v2529_v46 = vpack.c.bf16 %v463_v38, %v447_v37 }
  0xad   : > { %2544 = vmatprep.subr.bf16.mxu1 %v2543_v55  ;;  %829 = vmatprep.mubr.f32.mxu0 %v3233_v0  ;;  %v498_v45 = vld [vmem:[#allocation5 + $0x6b8] sm:$0xff]  ;;  %v2561_v47 = vpack.c.bf16 %v465_v41, %v449_v39  ;;  %v2531_v49 = vpack.c.bf16 %v496_v43, %v480_v42  ;;  %v479_v50 = vld [vmem:[#allocation5 + $0x620] sm:$0xff]  ;;  %v481_v52 = vld [vmem:[#allocation5 + $0x630] sm:$0xff] }
  0xae   : > { %900 = vmatprep.mubr.f32.mxu1 %v3233_v0  ;;  %v495_v51 = vld [vmem:[#allocation5 + $0x6a0] sm:$0xff]  ;;  %v2563_v53 = vpack.c.bf16 %v498_v45, %v482_v44  ;;  %v497_v54 = vld [vmem:[#allocation5 + $0x6b0] sm:$0xff]  ;;  %v512_v55 = vld [vmem:[#allocation5 + $0x728] sm:$0xff] }
  0xaf   : > { %2514 = vmatpush1.bf16.msra.mxu0 %v2513_v61  ;;  %v528_v56 = vld [vmem:[#allocation5 + $0x7a8] sm:$0xff]  ;;  %v514_v57 = vld [vmem:[#allocation5 + $0x738] sm:$0xff]  ;;  %v2533_v59 = vpack.c.bf16 %v495_v51, %v479_v50  ;;  %v2565_v60 = vpack.c.bf16 %v497_v54, %v481_v52  ;;  %v513_v1 = vld [vmem:[#allocation5 + $0x730] sm:$0xff] }
  0xb0   : > { %2546 = vmatpush1.bf16.msra.mxu1 %v2545_v62  ;;  %2516 = vmatprep.subr.bf16.mxu0 %v2515_v63  ;;  %v530_v58 = vld [vmem:[#allocation5 + $0x7b8] sm:$0xff]  ;;  %v2535_v61 = vpack.c.bf16 %v528_v56, %v512_v55  ;;  %v511_v62 = vld [vmem:[#allocation5 + $0x720] sm:$0xff]  ;;  %v529_v3 = vld [vmem:[#allocation5 + $0x7b0] sm:$0xff] }
  0xb1   : > { %2548 = vmatprep.subr.bf16.mxu1 %v2547_v4  ;;  %v527_v63 = vld [vmem:[#allocation5 + $0x7a0] sm:$0xff]  ;;  %v2567_v2 = vpack.c.bf16 %v530_v58, %v514_v57  ;;  %v292_v4 = vld [vmem:[#allocation5 + $0x48] sm:$0xff]  ;;  %v294_v6 = vld [vmem:[#allocation5 + $0x58] sm:$0xff]  ;;  %v2569_v9 = vpack.c.bf16 %v529_v3, %v513_v1 }
  0xb2   : > { %v308_v5 = vld [vmem:[#allocation5 + $0xc8] sm:$0xff]  ;;  %v310_v7 = vld [vmem:[#allocation5 + $0xd8] sm:$0xff]  ;;  %v2537_v8 = vpack.c.bf16 %v527_v63, %v511_v62  ;;  %v293_v13 = vld [vmem:[#allocation5 + $0x50] sm:$0xff] }
  0xb3   : > { %2518 = vmatpush1.bf16.msra.mxu0 %v2517_v10  ;;  %v2571_v10 = vpack.c.bf16 %v308_v5, %v292_v4  ;;  %v2603_v14 = vpack.c.bf16 %v310_v7, %v294_v6  ;;  %v309_v15 = vld [vmem:[#allocation5 + $0xd0] sm:$0xff]  ;;  %v340_v17 = vld [vmem:[#allocation5 + $0x1c8] sm:$0xff]  ;;  %v326_v18 = vld [vmem:[#allocation5 + $0x158] sm:$0xff] }
  0xb4   : > { %2550 = vmatpush1.bf16.msra.mxu1 %v2549_v11  ;;  %2520 = vmatprep.subr.bf16.mxu0 %v2519_v12  ;;  %v291_v11 = vld [vmem:[#allocation5 + $0x40] sm:$0xff]  ;;  %v342_v19 = vld [vmem:[#allocation5 + $0x1d8] sm:$0xff]  ;;  %v2605_v21 = vpack.c.bf16 %v309_v15, %v293_v13  ;;  %v325_v25 = vld [vmem:[#allocation5 + $0x150] sm:$0xff] }
  0xb5   : > { %2552 = vmatprep.subr.bf16.mxu1 %v2551_v16  ;;  %v307_v12 = vld [vmem:[#allocation5 + $0xc0] sm:$0xff]  ;;  %v324_v16 = vld [vmem:[#allocation5 + $0x148] sm:$0xff]  ;;  %v2607_v26 = vpack.c.bf16 %v342_v19, %v326_v18  ;;  %v341_v27 = vld [vmem:[#allocation5 + $0x1d0] sm:$0xff] }
  0xb6   : > { %v2573_v20 = vpack.c.bf16 %v307_v12, %v291_v11  ;;  %v372_v29 = vld [vmem:[#allocation5 + $0x2c8] sm:$0xff]  ;;  %v358_v30 = vld [vmem:[#allocation5 + $0x258] sm:$0xff]  ;;  %v2609_v33 = vpack.c.bf16 %v341_v27, %v325_v25  ;;  %v357_v37 = vld [vmem:[#allocation5 + $0x250] sm:$0xff] }
  0xb7   : > { %2522 = vmatpush1.bf16.msra.mxu0 %v2521_v22  ;;  %v2575_v22 = vpack.c.bf16 %v340_v17, %v324_v16  ;;  %v374_v31 = vld [vmem:[#allocation5 + $0x2d8] sm:$0xff]  ;;  %v373_v39 = vld [vmem:[#allocation5 + $0x2d0] sm:$0xff]  ;;  %v404_v41 = vld [vmem:[#allocation5 + $0x3c8] sm:$0xff] }
  0xb8   : > { %2554 = vmatpush1.bf16.msra.mxu1 %v2553_v23  ;;  %2524 = vmatprep.subr.bf16.mxu0 %v2523_v24  ;;  %v323_v23 = vld [vmem:[#allocation5 + $0x140] sm:$0xff]  ;;  %v2611_v38 = vpack.c.bf16 %v374_v31, %v358_v30  ;;  %v390_v42 = vld [vmem:[#allocation5 + $0x358] sm:$0xff]  ;;  %v2613_v45 = vpack.c.bf16 %v373_v39, %v357_v37  ;;  %v389_v50 = vld [vmem:[#allocation5 + $0x350] sm:$0xff] }
  0xb9   : > { %2556 = vmatprep.subr.bf16.mxu1 %v2555_v28  ;;  %v339_v24 = vld [vmem:[#allocation5 + $0x1c0] sm:$0xff]  ;;  %v356_v28 = vld [vmem:[#allocation5 + $0x248] sm:$0xff]  ;;  %v406_v43 = vld [vmem:[#allocation5 + $0x3d8] sm:$0xff] }
  0xba   : > { %v2577_v32 = vpack.c.bf16 %v339_v24, %v323_v23  ;;  %v2615_v51 = vpack.c.bf16 %v406_v43, %v390_v42  ;;  %v405_v52 = vld [vmem:[#allocation5 + $0x3d0] sm:$0xff]  ;;  %v436_v54 = vld [vmem:[#allocation5 + $0x4c8] sm:$0xff]  ;;  %v422_v55 = vld [vmem:[#allocation5 + $0x458] sm:$0xff] }
  0xbb   : > { %2526 = vmatpush1.bf16.msra.mxu0 %v2525_v34  ;;  %v2579_v34 = vpack.c.bf16 %v372_v29, %v356_v28  ;;  %v438_v56 = vld [vmem:[#allocation5 + $0x4d8] sm:$0xff]  ;;  %v2617_v58 = vpack.c.bf16 %v405_v52, %v389_v50  ;;  %v421_v62 = vld [vmem:[#allocation5 + $0x450] sm:$0xff]  ;;  %v468_v3 = vld [vmem:[#allocation5 + $0x5c8] sm:$0xff] }
  0xbc   : > { %2558 = vmatpush1.bf16.msra.mxu1 %v2557_v35  ;;  %2528 = vmatprep.subr.bf16.mxu0 %v2527_v36  ;;  %v355_v35 = vld [vmem:[#allocation5 + $0x240] sm:$0xff]  ;;  %v2619_v63 = vpack.c.bf16 %v438_v56, %v422_v55  ;;  %v437_v1 = vld [vmem:[#allocation5 + $0x4d0] sm:$0xff]  ;;  %v454_v4 = vld [vmem:[#allocation5 + $0x558] sm:$0xff] }
  0xbd   : > { %2560 = vmatprep.subr.bf16.mxu1 %v2559_v40  ;;  %v371_v36 = vld [vmem:[#allocation5 + $0x2c0] sm:$0xff]  ;;  %v388_v40 = vld [vmem:[#allocation5 + $0x348] sm:$0xff]  ;;  %v470_v5 = vld [vmem:[#allocation5 + $0x5d8] sm:$0xff]  ;;  %v2621_v7 = vpack.c.bf16 %v437_v1, %v421_v62 }
  0xbe   : > { %v2581_v44 = vpack.c.bf16 %v371_v36, %v355_v35  ;;  %v453_v11 = vld [vmem:[#allocation5 + $0x550] sm:$0xff]  ;;  %v2623_v12 = vpack.c.bf16 %v470_v5, %v454_v4  ;;  %v500_v15 = vld [vmem:[#allocation5 + $0x6c8] sm:$0xff]  ;;  %v486_v16 = vld [vmem:[#allocation5 + $0x658] sm:$0xff] }
  0xbf   : > { %2530 = vmatpush1.bf16.msra.mxu0 %v2529_v46  ;;  %v2583_v46 = vpack.c.bf16 %v404_v41, %v388_v40  ;;  %v469_v13 = vld [vmem:[#allocation5 + $0x5d0] sm:$0xff]  ;;  %v502_v17 = vld [vmem:[#allocation5 + $0x6d8] sm:$0xff]  ;;  %v532_v27 = vld [vmem:[#allocation5 + $0x7c8] sm:$0xff] }
  0xc0   : > { %2562 = vmatpush1.bf16.msra.mxu1 %v2561_v47  ;;  %2532 = vmatprep.subr.bf16.mxu0 %v2531_v49  ;;  %v387_v47 = vld [vmem:[#allocation5 + $0x340] sm:$0xff]  ;;  %v2625_v19 = vpack.c.bf16 %v469_v13, %v453_v11  ;;  %v485_v23 = vld [vmem:[#allocation5 + $0x650] sm:$0xff]  ;;  %v2627_v24 = vpack.c.bf16 %v502_v17, %v486_v16  ;;  %v518_v28 = vld [vmem:[#allocation5 + $0x758] sm:$0xff] }
  0xc1   : > { %2564 = vmatprep.subr.bf16.mxu1 %v2563_v53  ;;  %v403_v49 = vld [vmem:[#allocation5 + $0x3c0] sm:$0xff]  ;;  %v420_v53 = vld [vmem:[#allocation5 + $0x448] sm:$0xff]  ;;  %v501_v25 = vld [vmem:[#allocation5 + $0x6d0] sm:$0xff] }
  0xc2   : > { %v2585_v57 = vpack.c.bf16 %v403_v49, %v387_v47  ;;  %v534_v29 = vld [vmem:[#allocation5 + $0x7d8] sm:$0xff]  ;;  %v2629_v31 = vpack.c.bf16 %v501_v25, %v485_v23  ;;  %v517_v35 = vld [vmem:[#allocation5 + $0x750] sm:$0xff]  ;;  %v312_v39 = vld [vmem:[#allocation5 + $0xe8] sm:$0xff] }
  0xc3   : > { %2534 = vmatpush1.bf16.msra.mxu0 %v2533_v59  ;;  %v2587_v59 = vpack.c.bf16 %v436_v54, %v420_v53  ;;  %v2631_v36 = vpack.c.bf16 %v534_v29, %v518_v28  ;;  %v533_v37 = vld [vmem:[#allocation5 + $0x7d0] sm:$0xff]  ;;  %v298_v40 = vld [vmem:[#allocation5 + $0x78] sm:$0xff]  ;;  %v344_v52 = vld [vmem:[#allocation5 + $0x1e8] sm:$0xff] }
  0xc4   : > { %2566 = vmatpush1.bf16.msra.mxu1 %v2565_v60  ;;  %2536 = vmatprep.subr.bf16.mxu0 %v2535_v61  ;;  %v419_v60 = vld [vmem:[#allocation5 + $0x440] sm:$0xff]  ;;  %v314_v41 = vld [vmem:[#allocation5 + $0xf8] sm:$0xff]  ;;  %v2633_v43 = vpack.c.bf16 %v533_v37, %v517_v35  ;;  %v297_v47 = vld [vmem:[#allocation5 + $0x70] sm:$0xff] }
  0xc5   : > { %2568 = vmatprep.subr.bf16.mxu1 %v2567_v2  ;;  %v435_v61 = vld [vmem:[#allocation5 + $0x4c0] sm:$0xff]  ;;  %v452_v2 = vld [vmem:[#allocation5 + $0x548] sm:$0xff]  ;;  %v2667_v49 = vpack.c.bf16 %v314_v41, %v298_v40  ;;  %v313_v50 = vld [vmem:[#allocation5 + $0xf0] sm:$0xff] }
  0xc6   : > { %v2589_v6 = vpack.c.bf16 %v435_v61, %v419_v60  ;;  %v330_v53 = vld [vmem:[#allocation5 + $0x178] sm:$0xff]  ;;  %v2669_v56 = vpack.c.bf16 %v313_v50, %v297_v47  ;;  %v329_v60 = vld [vmem:[#allocation5 + $0x170] sm:$0xff]  ;;  %v376_v1 = vld [vmem:[#allocation5 + $0x2e8] sm:$0xff] }
  0xc7   : > { %2538 = vmatpush1.bf16.msra.mxu0 %v2537_v8  ;;  %v2591_v8 = vpack.c.bf16 %v468_v3, %v452_v2  ;;  %v346_v54 = vld [vmem:[#allocation5 + $0x1f8] sm:$0xff]  ;;  %v345_v62 = vld [vmem:[#allocation5 + $0x1f0] sm:$0xff]  ;;  %v408_v13 = vld [vmem:[#allocation5 + $0x3e8] sm:$0xff] }
  0xc8   : > { %2570 = vmatpush1.bf16.msra.mxu1 %v2569_v9  ;;  %2572 = vmatprep.subr.bf16.mxu0 %v2571_v10  ;;  %v451_v9 = vld [vmem:[#allocation5 + $0x540] sm:$0xff]  ;;  %v2671_v61 = vpack.c.bf16 %v346_v54, %v330_v53  ;;  %v362_v2 = vld [vmem:[#allocation5 + $0x278] sm:$0xff]  ;;  %v2673_v5 = vpack.c.bf16 %v345_v62, %v329_v60  ;;  %v377_v11 = vld [vmem:[#allocation5 + $0x2f0] sm:$0xff] }
  0xc9   : > { %2604 = vmatprep.subr.bf16.mxu1 %v2603_v14  ;;  %v467_v10 = vld [vmem:[#allocation5 + $0x5c0] sm:$0xff]  ;;  %v484_v14 = vld [vmem:[#allocation5 + $0x648] sm:$0xff]  ;;  %v378_v3 = vld [vmem:[#allocation5 + $0x2f8] sm:$0xff] }
  0xca   : > { %830 = vmatmul.mubr.f32.vlgmr.msra.gmra.mrb[2].mxu0 %v3481_v48  ;;  %v2593_v18 = vpack.c.bf16 %v467_v10, %v451_v9  ;;  %v361_v9 = vld [vmem:[#allocation5 + $0x270] sm:$0xff]  ;;  %v2675_v10 = vpack.c.bf16 %v378_v3, %v362_v2  ;;  %v440_v25 = vld [vmem:[#allocation5 + $0x4e8] sm:$0xff]  ;;  %v458_v37 = vld [vmem:[#allocation5 + $0x578] sm:$0xff] }
  0xcb   : > { %901 = vmatmul.mubr.f32.vlgmr.msra.gmra.mrb[2].mxu1 %v3481_v48  ;;  %2574 = vmatpush1.bf16.msra.mxu0 %v2573_v20  ;;  %v2595_v20 = vpack.c.bf16 %v500_v15, %v484_v14  ;;  %v394_v14 = vld [vmem:[#allocation5 + $0x378] sm:$0xff]  ;;  %v2677_v17 = vpack.c.bf16 %v377_v11, %v361_v9  ;;  %v409_v23 = vld [vmem:[#allocation5 + $0x3f0] sm:$0xff]  ;;  %v456_v35 = vld [vmem:[#allocation5 + $0x568] sm:$0xff] }
  0xcc   : > { %2606 = vmatpush1.bf16.msra.mxu1 %v2605_v21  ;;  %2576 = vmatprep.subr.bf16.mxu0 %v2575_v22  ;;  %v483_v21 = vld [vmem:[#allocation5 + $0x640] sm:$0xff]  ;;  %v410_v15 = vld [vmem:[#allocation5 + $0x3f8] sm:$0xff]  ;;  %v488_v47 = vld [vmem:[#allocation5 + $0x668] sm:$0xff] }
  0xcd   : > { %2608 = vmatprep.subr.bf16.mxu1 %v2607_v26  ;;  %971 = vmatprep.mubr.f32.mxu0 %v3233_v0  ;;  %v499_v22 = vld [vmem:[#allocation5 + $0x6c0] sm:$0xff]  ;;  %v516_v26 = vld [vmem:[#allocation5 + $0x748] sm:$0xff]  ;;  %v490_v50 = vld [vmem:[#allocation5 + $0x678] sm:$0xff] }
  0xce   : > { %1042 = vmatprep.mubr.f32.mxu1 %v3233_v0  ;;  %v2597_v30 = vpack.c.bf16 %v499_v22, %v483_v21  ;;  %v393_v21 = vld [vmem:[#allocation5 + $0x370] sm:$0xff]  ;;  %v2679_v22 = vpack.c.bf16 %v410_v15, %v394_v14  ;;  %v520_v60 = vld [vmem:[#allocation5 + $0x768] sm:$0xff]  ;;  %v522_v62 = vld [vmem:[#allocation5 + $0x778] sm:$0xff] }
  0xcf   : > { %2578 = vmatpush1.bf16.msra.mxu0 %v2577_v32  ;;  %v2599_v32 = vpack.c.bf16 %v532_v27, %v516_v26  ;;  %v426_v26 = vld [vmem:[#allocation5 + $0x478] sm:$0xff]  ;;  %v1223_v9 = vld [vmem:[#allocation8 + $0x80] sm:$0xff] }
  0xd0   : > { %2610 = vmatpush1.bf16.msra.mxu1 %v2609_v33  ;;  %2580 = vmatprep.subr.bf16.mxu0 %v2579_v34  ;;  %v515_v33 = vld [vmem:[#allocation5 + $0x740] sm:$0xff]  ;;  %v442_v27 = vld [vmem:[#allocation5 + $0x4f8] sm:$0xff]  ;;  %v1255_v11 = vld [vmem:[#allocation8 + $0x180] sm:$0xff] }
  0xd1   : > { %2612 = vmatprep.subr.bf16.mxu1 %v2611_v38  ;;  %v531_v34 = vld [vmem:[#allocation5 + $0x7c0] sm:$0xff]  ;;  %v296_v38 = vld [vmem:[#allocation5 + $0x68] sm:$0xff] }
  0xd2   : > { %v2601_v42 = vpack.c.bf16 %v531_v34, %v515_v33  ;;  %v2683_v33 = vpack.c.bf16 %v442_v27, %v426_v26  ;;  %v441_v34 = vld [vmem:[#allocation5 + $0x4f0] sm:$0xff] }
  0xd3   : > { %2582 = vmatpush1.bf16.msra.mxu0 %v2581_v44  ;;  %v2635_v44 = vpack.c.bf16 %v312_v39, %v296_v38  ;;  %v474_v38 = vld [vmem:[#allocation5 + $0x5f8] sm:$0xff] }
  0xd4   : > { %2614 = vmatpush1.bf16.msra.mxu1 %v2613_v45  ;;  %2584 = vmatprep.subr.bf16.mxu0 %v2583_v46  ;;  %v295_v45 = vld [vmem:[#allocation5 + $0x60] sm:$0xff] }
  0xd5   : > { %2616 = vmatprep.subr.bf16.mxu1 %v2615_v51  ;;  %v311_v46 = vld [vmem:[#allocation5 + $0xe0] sm:$0xff]  ;;  %v328_v51 = vld [vmem:[#allocation5 + $0x168] sm:$0xff] }
  0xd6   : > { %v2637_v55 = vpack.c.bf16 %v311_v46, %v295_v45  ;;  %v2687_v45 = vpack.c.bf16 %v474_v38, %v458_v37  ;;  %v473_v46 = vld [vmem:[#allocation5 + $0x5f0] sm:$0xff] }
  0xd7   : > { %2586 = vmatpush1.bf16.msra.mxu0 %v2585_v57  ;;  %v2639_v57 = vpack.c.bf16 %v344_v52, %v328_v51  ;;  %v506_v51 = vld [vmem:[#allocation5 + $0x6f8] sm:$0xff] }
  0xd8   : > { %2618 = vmatpush1.bf16.msra.mxu1 %v2617_v58  ;;  %2588 = vmatprep.subr.bf16.mxu0 %v2587_v59  ;;  %v327_v58 = vld [vmem:[#allocation5 + $0x160] sm:$0xff] }
  0xd9   : > { %2620 = vmatprep.subr.bf16.mxu1 %v2619_v63  ;;  %v343_v59 = vld [vmem:[#allocation5 + $0x1e0] sm:$0xff]  ;;  %v360_v63 = vld [vmem:[#allocation5 + $0x268] sm:$0xff] }
  0xda   : > { %v2641_v4 = vpack.c.bf16 %v343_v59, %v327_v58  ;;  %v2691_v58 = vpack.c.bf16 %v506_v51, %v490_v50  ;;  %v505_v59 = vld [vmem:[#allocation5 + $0x6f0] sm:$0xff]  ;;  %v1213_v51 = vld [vmem:[#allocation8 + $0x30] sm:$0xff] }
  0xdb   : > { %2590 = vmatpush1.bf16.msra.mxu0 %v2589_v6  ;;  %v2643_v6 = vpack.c.bf16 %v376_v1, %v360_v63  ;;  %v538_v63 = vld [vmem:[#allocation5 + $0x7f8] sm:$0xff] }
  0xdc   : > { %2622 = vmatpush1.bf16.msra.mxu1 %v2621_v7  ;;  %2592 = vmatprep.subr.bf16.mxu0 %v2591_v8  ;;  %v359_v7 = vld [vmem:[#allocation5 + $0x260] sm:$0xff] }
  0xdd   : > { %2624 = vmatprep.subr.bf16.mxu1 %v2623_v12  ;;  %v375_v8 = vld [vmem:[#allocation5 + $0x2e0] sm:$0xff]  ;;  %v392_v12 = vld [vmem:[#allocation5 + $0x368] sm:$0xff] }
  0xde   : > { %v2645_v16 = vpack.c.bf16 %v375_v8, %v359_v7  ;;  %v2695_v7 = vpack.c.bf16 %v538_v63, %v522_v62  ;;  %v537_v8 = vld [vmem:[#allocation5 + $0x7f0] sm:$0xff] }
  0xdf   : > { %2594 = vmatpush1.bf16.msra.mxu0 %v2593_v18  ;;  %v2647_v18 = vpack.c.bf16 %v408_v13, %v392_v12  ;;  %v1256_v12 = vld [vmem:[#allocation8 + $0x188] sm:$0xff]  ;;  %v1215_v63 = vld [vmem:[#allocation8 + $0x40] sm:$0xff] }
  0xe0   : > { %2626 = vmatpush1.bf16.msra.mxu1 %v2625_v19  ;;  %2596 = vmatprep.subr.bf16.mxu0 %v2595_v20  ;;  %v391_v19 = vld [vmem:[#allocation5 + $0x360] sm:$0xff] }
  0xe1   : > { %2628 = vmatprep.subr.bf16.mxu1 %v2627_v24  ;;  %v407_v20 = vld [vmem:[#allocation5 + $0x3e0] sm:$0xff]  ;;  %v424_v24 = vld [vmem:[#allocation5 + $0x468] sm:$0xff] }
  0xe2   : > { %v2649_v28 = vpack.c.bf16 %v407_v20, %v391_v19  ;;  %v2651_v29 = vpack.c.bf16 %v440_v25, %v424_v24  ;;  %v2731_v19 = vpack.c.bf16 %v1256_v12, %v1255_v11  ;;  %v1240_v20 = vld [vmem:[#allocation8 + $0x108] sm:$0xff]  ;;  %v1258_v24 = vld [vmem:[#allocation8 + $0x198] sm:$0xff]  ;;  %v1217_v12 = vld [vmem:[#allocation8 + $0x50] sm:$0xff] }
  0xe3   : > { %2598 = vmatpush1.bf16.msra.mxu0 %v2597_v30  ;;  %v423_v30 = vld [vmem:[#allocation5 + $0x460] sm:$0xff] }
  0xe4   : > { %2630 = vmatpush1.bf16.msra.mxu1 %v2629_v31  ;;  %2600 = vmatprep.subr.bf16.mxu0 %v2599_v32  ;;  %v439_v31 = vld [vmem:[#allocation5 + $0x4e0] sm:$0xff]  ;;  %v425_v32 = vld [vmem:[#allocation5 + $0x470] sm:$0xff] }
  0xe5   : > { %2632 = vmatprep.subr.bf16.mxu1 %v2631_v36  ;;  %v472_v36 = vld [vmem:[#allocation5 + $0x5e8] sm:$0xff]  ;;  %v2653_v39 = vpack.c.bf16 %v439_v31, %v423_v30  ;;  %v2685_v40 = vpack.c.bf16 %v441_v34, %v425_v32  ;;  %v1227_v32 = vld [vmem:[#allocation8 + $0xa0] sm:$0xff] }
  0xe6   : > { %v2655_v41 = vpack.c.bf16 %v472_v36, %v456_v35  ;;  %v1242_v31 = vld [vmem:[#allocation8 + $0x118] sm:$0xff]  ;;  %v1259_v34 = vld [vmem:[#allocation8 + $0x1a0] sm:$0xff]  ;;  %v1260_v35 = vld [vmem:[#allocation8 + $0x1a8] sm:$0xff] }
  0xe7   : > { %2602 = vmatpush1.bf16.msra.mxu0 %v2601_v42  ;;  %v455_v42 = vld [vmem:[#allocation5 + $0x560] sm:$0xff] }
  0xe8   : > { %2634 = vmatpush1.bf16.msra.mxu1 %v2633_v43  ;;  %2636 = vmatprep.subr.bf16.mxu0 %v2635_v44  ;;  %v471_v43 = vld [vmem:[#allocation5 + $0x5e0] sm:$0xff]  ;;  %v457_v44 = vld [vmem:[#allocation5 + $0x570] sm:$0xff] }
  0xe9   : > { %2668 = vmatprep.subr.bf16.mxu1 %v2667_v49  ;;  %v504_v49 = vld [vmem:[#allocation5 + $0x6e8] sm:$0xff]  ;;  %v2657_v52 = vpack.c.bf16 %v471_v43, %v455_v42  ;;  %v2689_v53 = vpack.c.bf16 %v473_v46, %v457_v44  ;;  %v2739_v42 = vpack.c.bf16 %v1260_v35, %v1259_v34  ;;  %v1244_v43 = vld [vmem:[#allocation8 + $0x128] sm:$0xff]  ;;  %v1229_v44 = vld [vmem:[#allocation8 + $0xb0] sm:$0xff] }
  0xea   : > { %972 = vmatmul.mubr.f32.vlgmr.msra.gmra.mrb[4].mxu0 %v3481_v48  ;;  %v2659_v54 = vpack.c.bf16 %v504_v49, %v488_v47  ;;  %v1261_v46 = vld [vmem:[#allocation8 + $0x1b0] sm:$0xff]  ;;  %v1262_v47 = vld [vmem:[#allocation8 + $0x1b8] sm:$0xff] }
  0xeb   : > { %1043 = vmatmul.mubr.f32.vlgmr.msra.gmra.mrb[4].mxu1 %v3481_v48  ;;  %2638 = vmatpush1.bf16.msra.mxu0 %v2637_v55  ;;  %v487_v55 = vld [vmem:[#allocation5 + $0x660] sm:$0xff] }
  0xec   : > { %2670 = vmatpush1.bf16.msra.mxu1 %v2669_v56  ;;  %2640 = vmatprep.subr.bf16.mxu0 %v2639_v57  ;;  %v503_v56 = vld [vmem:[#allocation5 + $0x6e0] sm:$0xff]  ;;  %v489_v57 = vld [vmem:[#allocation5 + $0x670] sm:$0xff] }
  0xed   : > { %2672 = vmatprep.subr.bf16.mxu1 %v2671_v61  ;;  %1113 = vmatprep.mubr.f32.mxu0 %v3233_v0  ;;  %v536_v61 = vld [vmem:[#allocation5 + $0x7e8] sm:$0xff]  ;;  %v2661_v1 = vpack.c.bf16 %v503_v56, %v487_v55  ;;  %v2693_v2 = vpack.c.bf16 %v505_v59, %v489_v57  ;;  %v1231_v56 = vld [vmem:[#allocation8 + $0xc0] sm:$0xff]  ;;  %v1232_v57 = vld [vmem:[#allocation8 + $0xc8] sm:$0xff] }
  0xee   : > { %1184 = vmatprep.mubr.f32.mxu1 %v3233_v0  ;;  %v2681_v0 = vpack.c.bf16 %v409_v23, %v393_v21  ;;  %v2663_v3 = vpack.c.bf16 %v536_v61, %v520_v60  ;;  %v1225_v21 = vld [vmem:[#allocation8 + $0x90] sm:$0xff]  ;;  %v1246_v55 = vld [vmem:[#allocation8 + $0x138] sm:$0xff]  ;;  %v1264_v59 = vld [vmem:[#allocation8 + $0x1c8] sm:$0xff]  ;;  %v2715_v62 = vpack.c.bf16 %v1232_v57, %v1231_v56 }
  0xef   : > { %2642 = vmatpush1.bf16.msra.mxu0 %v2641_v4  ;;  %v519_v4 = vld [vmem:[#allocation5 + $0x760] sm:$0xff] }
  0xf0   : > { %2674 = vmatpush1.bf16.msra.mxu1 %v2673_v5  ;;  %2644 = vmatprep.subr.bf16.mxu0 %v2643_v6  ;;  %v535_v5 = vld [vmem:[#allocation5 + $0x7e0] sm:$0xff]  ;;  %v521_v6 = vld [vmem:[#allocation5 + $0x770] sm:$0xff] }
  0xf1   : > { %2676 = vmatprep.subr.bf16.mxu1 %v2675_v10  ;;  %v1224_v10 = vld [vmem:[#allocation8 + $0x88] sm:$0xff]  ;;  %v2665_v13 = vpack.c.bf16 %v535_v5, %v519_v4  ;;  %v2697_v14 = vpack.c.bf16 %v537_v8, %v521_v6  ;;  %v1257_v23 = vld [vmem:[#allocation8 + $0x190] sm:$0xff]  ;;  %v1234_v6 = vld [vmem:[#allocation8 + $0xd8] sm:$0xff] }
  0xf2   : > { %v2699_v15 = vpack.c.bf16 %v1224_v10, %v1223_v9  ;;  %v2735_v30 = vpack.c.bf16 %v1258_v24, %v1257_v23  ;;  %v1248_v4 = vld [vmem:[#allocation8 + $0x148] sm:$0xff]  ;;  %v1233_v5 = vld [vmem:[#allocation8 + $0xd0] sm:$0xff]  ;;  %v1266_v8 = vld [vmem:[#allocation8 + $0x1d8] sm:$0xff] }
  0xf3   : > { %2646 = vmatpush1.bf16.msra.mxu0 %v2645_v16  ;;  %v1207_v16 = vld [vmem:[#allocation8] sm:$0xff]  ;;  %v2719_v11 = vpack.c.bf16 %v1234_v6, %v1233_v5  ;;  %v1221_v35 = vld [vmem:[#allocation8 + $0x70] sm:$0xff]  ;;  %v1304_v6 = vld [vmem:[#allocation8 + $0x308] sm:$0xff] }
  0xf4   : > { %2678 = vmatpush1.bf16.msra.mxu1 %v2677_v17  ;;  %2648 = vmatprep.subr.bf16.mxu0 %v2647_v18  ;;  %v1208_v17 = vld [vmem:[#allocation8 + $0x8] sm:$0xff]  ;;  %v1239_v18 = vld [vmem:[#allocation8 + $0x100] sm:$0xff] }
  0xf5   : > { %2680 = vmatprep.subr.bf16.mxu1 %v2679_v22  ;;  %v1226_v22 = vld [vmem:[#allocation8 + $0x98] sm:$0xff]  ;;  %v2701_v25 = vpack.c.bf16 %v1208_v17, %v1207_v16  ;;  %v2733_v26 = vpack.c.bf16 %v1240_v20, %v1239_v18  ;;  %v1235_v17 = vld [vmem:[#allocation8 + $0xe0] sm:$0xff]  ;;  %v1236_v18 = vld [vmem:[#allocation8 + $0xe8] sm:$0xff] }
  0xf6   : > { %v2703_v27 = vpack.c.bf16 %v1226_v22, %v1225_v21  ;;  %v1250_v16 = vld [vmem:[#allocation8 + $0x158] sm:$0xff]  ;;  %v1268_v20 = vld [vmem:[#allocation8 + $0x1e8] sm:$0xff]  ;;  %v2723_v23 = vpack.c.bf16 %v1236_v18, %v1235_v17  ;;  %v1219_v24 = vld [vmem:[#allocation8 + $0x60] sm:$0xff] }
  0xf7   : > { %2650 = vmatpush1.bf16.msra.mxu0 %v2649_v28  ;;  %v1209_v28 = vld [vmem:[#allocation8 + $0x10] sm:$0xff] }
  0xf8   : > { %2682 = vmatpush1.bf16.msra.mxu1 %v2681_v0  ;;  %2652 = vmatprep.subr.bf16.mxu0 %v2651_v29  ;;  %v1210_v0 = vld [vmem:[#allocation8 + $0x18] sm:$0xff]  ;;  %v1241_v29 = vld [vmem:[#allocation8 + $0x110] sm:$0xff] }
  0xf9   : > { %2684 = vmatprep.subr.bf16.mxu1 %v2683_v33  ;;  %v1228_v33 = vld [vmem:[#allocation8 + $0xa8] sm:$0xff]  ;;  %v2705_v36 = vpack.c.bf16 %v1210_v0, %v1209_v28  ;;  %v2737_v37 = vpack.c.bf16 %v1242_v31, %v1241_v29  ;;  %v1237_v0 = vld [vmem:[#allocation8 + $0xf0] sm:$0xff]  ;;  %v1238_v29 = vld [vmem:[#allocation8 + $0xf8] sm:$0xff] }
  0xfa   : > { %v2707_v38 = vpack.c.bf16 %v1228_v33, %v1227_v32  ;;  %v1252_v28 = vld [vmem:[#allocation8 + $0x168] sm:$0xff]  ;;  %v1270_v31 = vld [vmem:[#allocation8 + $0x1f8] sm:$0xff]  ;;  %v2727_v34 = vpack.c.bf16 %v1238_v29, %v1237_v0 }
  0xfb   : > { %2654 = vmatpush1.bf16.msra.mxu0 %v2653_v39  ;;  %v1211_v39 = vld [vmem:[#allocation8 + $0x20] sm:$0xff] }
  0xfc   : > { %2686 = vmatpush1.bf16.msra.mxu1 %v2685_v40  ;;  %2656 = vmatprep.subr.bf16.mxu0 %v2655_v41  ;;  %v1212_v40 = vld [vmem:[#allocation8 + $0x28] sm:$0xff]  ;;  %v1243_v41 = vld [vmem:[#allocation8 + $0x120] sm:$0xff] }
  0xfd   : > { %2688 = vmatprep.subr.bf16.mxu1 %v2687_v45  ;;  %v1230_v45 = vld [vmem:[#allocation8 + $0xb8] sm:$0xff]  ;;  %v2709_v49 = vpack.c.bf16 %v1212_v40, %v1211_v39  ;;  %v1287_v40 = vld [vmem:[#allocation8 + $0x280] sm:$0xff] }
  0xfe   : > { %v2711_v50 = vpack.c.bf16 %v1230_v45, %v1229_v44  ;;  %v1254_v39 = vld [vmem:[#allocation8 + $0x178] sm:$0xff] }
  0xff   : > { %2658 = vmatpush1.bf16.msra.mxu0 %v2657_v52  ;;  %v1214_v52 = vld [vmem:[#allocation8 + $0x38] sm:$0xff] }
 0x100   : > { %2690 = vmatpush1.bf16.msra.mxu1 %v2689_v53  ;;  %2660 = vmatprep.subr.bf16.mxu0 %v2659_v54  ;;  %v1245_v53 = vld [vmem:[#allocation8 + $0x130] sm:$0xff]  ;;  %v2743_v54 = vpack.c.bf16 %v1262_v47, %v1261_v46  ;;  %v2713_v60 = vpack.c.bf16 %v1214_v52, %v1213_v51 }
 0x101   : > { %2692 = vmatprep.subr.bf16.mxu1 %v2691_v58  ;;  %v1263_v58 = vld [vmem:[#allocation8 + $0x1c0] sm:$0xff]  ;;  %v2745_v61 = vpack.c.bf16 %v1246_v55, %v1245_v53  ;;  %v3500_v51 = vld [vmem:[#allocation7] sm:$0xff] }
 0x103   : > { %2662 = vmatpush1.bf16.msra.mxu0 %v2661_v1  ;;  %v1216_v1 = vld [vmem:[#allocation8 + $0x48] sm:$0xff] }
 0x104   : > { %2694 = vmatpush1.bf16.msra.mxu1 %v2693_v2  ;;  %2664 = vmatprep.subr.bf16.mxu0 %v2663_v3  ;;  %v1247_v2 = vld [vmem:[#allocation8 + $0x140] sm:$0xff]  ;;  %v2747_v3 = vpack.c.bf16 %v1264_v59, %v1263_v58  ;;  %v2717_v9 = vpack.c.bf16 %v1216_v1, %v1215_v63  ;;  %v1272_v1 = vld [vmem:[#allocation8 + $0x208] sm:$0xff] }
 0x105   : > { %2696 = vmatprep.subr.bf16.mxu1 %v2695_v7  ;;  %v1265_v7 = vld [vmem:[#allocation8 + $0x1d0] sm:$0xff]  ;;  %v2749_v10 = vpack.c.bf16 %v1248_v4, %v1247_v2  ;;  %v1271_v63 = vld [vmem:[#allocation8 + $0x200] sm:$0xff] }
 0x106   : > { %v1303_v2 = vld [vmem:[#allocation8 + $0x300] sm:$0xff] }
 0x107   : > { %2666 = vmatpush1.bf16.msra.mxu0 %v2665_v13  ;;  %v1218_v13 = vld [vmem:[#allocation8 + $0x58] sm:$0xff]  ;;  %v2797_v17 = vpack.c.bf16 %v1304_v6, %v1303_v2  ;;  %v1297_v2 = vld [vmem:[#allocation8 + $0x2d0] sm:$0xff] }
 0x108   : > { %2698 = vmatpush1.bf16.msra.mxu1 %v2697_v14  ;;  %2700 = vmatprep.subr.bf16.mxu0 %v2699_v15  ;;  %v1249_v14 = vld [vmem:[#allocation8 + $0x150] sm:$0xff]  ;;  %v2751_v15 = vpack.c.bf16 %v1266_v8, %v1265_v7  ;;  %v2721_v21 = vpack.c.bf16 %v1218_v13, %v1217_v12  ;;  %v1290_v8 = vld [vmem:[#allocation8 + $0x298] sm:$0xff] }
 0x109   : > { %2732 = vmatprep.subr.bf16.mxu1 %v2731_v19  ;;  %v1267_v19 = vld [vmem:[#allocation8 + $0x1e0] sm:$0xff]  ;;  %v2753_v22 = vpack.c.bf16 %v1250_v16, %v1249_v14  ;;  %v1289_v7 = vld [vmem:[#allocation8 + $0x290] sm:$0xff]  ;;  %v1322_v12 = vld [vmem:[#allocation8 + $0x398] sm:$0xff] }
 0x10a   : > { %1114 = vmatmul.mubr.f32.vlgmr.msra.gmra.mrb[6].mxu0 %v3481_v48  ;;  %v2767_v18 = vpack.c.bf16 %v1290_v8, %v1289_v7 }
 0x10b   : > { %1185 = vmatmul.mubr.f32.vlgmr.msra.gmra.mrb[6].mxu1 %v3481_v48  ;;  %2702 = vmatpush3.bf16.msra.mxu0 %v2701_v25  ;;  %v2741_v48 = vpack.c.bf16 %v1244_v43, %v1243_v41  ;;  %v1220_v25 = vld [vmem:[#allocation8 + $0x68] sm:$0xff] }
 0x10c   : > { %2734 = vmatpush3.bf16.msra.mxu1 %v2733_v26  ;;  %2704 = vmatprep.subr.bf16.mxu0 %v2703_v27  ;;  %v1251_v26 = vld [vmem:[#allocation8 + $0x160] sm:$0xff]  ;;  %v2755_v27 = vpack.c.bf16 %v1268_v20, %v1267_v19  ;;  %v2725_v32 = vpack.c.bf16 %v1220_v25, %v1219_v24  ;;  %v1288_v41 = vld [vmem:[#allocation8 + $0x288] sm:$0xff]  ;;  %v1273_v19 = vld [vmem:[#allocation8 + $0x210] sm:$0xff] }
 0x10d   : > { %2736 = vmatprep.subr.bf16.mxu1 %v2735_v30  ;;  %v1269_v30 = vld [vmem:[#allocation8 + $0x1f0] sm:$0xff]  ;;  %v2757_v33 = vpack.c.bf16 %v1252_v28, %v1251_v26  ;;  %v1320_v43 = vld [vmem:[#allocation8 + $0x388] sm:$0xff]  ;;  %v2763_v46 = vpack.c.bf16 %v1288_v41, %v1287_v40  ;;  %v1274_v20 = vld [vmem:[#allocation8 + $0x218] sm:$0xff] }
 0x10e   : > { %v1291_v24 = vld [vmem:[#allocation8 + $0x2a0] sm:$0xff]  ;;  %v1292_v25 = vld [vmem:[#allocation8 + $0x2a8] sm:$0xff]  ;;  %v2769_v28 = vpack.c.bf16 %v1274_v20, %v1273_v19 }
 0x10f   : > { %2706 = vmatpush3.bf16.msra.mxu0 %v2705_v36  ;;  %v1222_v36 = vld [vmem:[#allocation8 + $0x78] sm:$0xff]  ;;  %v1323_v26 = vld [vmem:[#allocation8 + $0x3a0] sm:$0xff]  ;;  %v2771_v29 = vpack.c.bf16 %v1292_v25, %v1291_v24 }
 0x110   : > { %2738 = vmatpush3.bf16.msra.mxu1 %v2737_v37  ;;  %2708 = vmatprep.subr.bf16.mxu0 %v2707_v38  ;;  %v1253_v37 = vld [vmem:[#allocation8 + $0x170] sm:$0xff]  ;;  %v2759_v38 = vpack.c.bf16 %v1270_v31, %v1269_v30  ;;  %v2729_v44 = vpack.c.bf16 %v1222_v36, %v1221_v35  ;;  %v1275_v30 = vld [vmem:[#allocation8 + $0x220] sm:$0xff]  ;;  %v1276_v31 = vld [vmem:[#allocation8 + $0x228] sm:$0xff] }
 0x111   : > { %2740 = vmatprep.subr.bf16.mxu1 %v2739_v42  ;;  %v1319_v42 = vld [vmem:[#allocation8 + $0x380] sm:$0xff]  ;;  %v2761_v45 = vpack.c.bf16 %v1254_v39, %v1253_v37  ;;  %v1293_v35 = vld [vmem:[#allocation8 + $0x2b0] sm:$0xff]  ;;  %v1294_v36 = vld [vmem:[#allocation8 + $0x2b8] sm:$0xff]  ;;  %v2773_v39 = vpack.c.bf16 %v1276_v31, %v1275_v30 }
 0x112   : > { %v2795_v47 = vpack.c.bf16 %v1320_v43, %v1319_v42  ;;  %v1325_v37 = vld [vmem:[#allocation8 + $0x3b0] sm:$0xff]  ;;  %v2775_v41 = vpack.c.bf16 %v1294_v36, %v1293_v35  ;;  %v1278_v43 = vld [vmem:[#allocation8 + $0x238] sm:$0xff]  ;;  %v1315_v24 = vld [vmem:[#allocation8 + $0x360] sm:$0xff] }
 0x113   : > { %2710 = vmatpush3.bf16.msra.mxu0 %v2709_v49  ;;  %v543_v49 = vlaneseq  ;;  %v1277_v42 = vld [vmem:[#allocation8 + $0x230] sm:$0xff] }
 0x114   : > { %2742 = vmatpush3.bf16.msra.mxu1 %v2741_v48  ;;  %2712 = vmatprep.subr.bf16.mxu0 %v2711_v50  ;;  %v1333_v31 = vld [vmem:[#allocation8 + $0x3f0] sm:$0xff] }
 0x115   : > { %2744 = vmatprep.subr.bf16.mxu1 %v2743_v54  ;;  %v3497_v48 = vshrl.u32 %v543_v49, 7  ;;  %v1296_v49 = vld [vmem:[#allocation8 + $0x2c8] sm:$0xff] }
 0x117   : > { %2714 = vmatpush3.bf16.msra.mxu0 %v2713_v60  ;;  %v545_v50 = vsub.s32 0, %v3497_v48  ;;  %v553_v52 = vsub.s32 2, %v3497_v48  ;;  %v549_v53 = vsub.s32 1, %v3497_v48  ;;  %v557_v54 = vsub.s32 3, %v3497_v48 }
 0x118   : > { %2746 = vmatpush3.bf16.msra.mxu1 %v2745_v61  ;;  %2716 = vmatprep.subr.bf16.mxu0 %v2715_v62  ;;  %v573_v30 = vsub.s32 7, %v3497_v48 }
 0x119   : > { %2748 = vmatprep.subr.bf16.mxu1 %v2747_v3  ;;  %v546_v55 = vrot.slane %v3500_v51, %v545_v50  ;;  %v554_v56 = vrot.slane %v3500_v51, %v553_v52  ;;  %v550_v57 = vrot.slane %v3500_v51, %v549_v53  ;;  %v558_v58 = vrot.slane %v3500_v51, %v557_v54 }
 0x11b   : > { %2718 = vmatpush3.bf16.msra.mxu0 %v2717_v9 }
 0x11c   : > { %2750 = vmatpush3.bf16.msra.mxu1 %v2749_v10  ;;  %2720 = vmatprep.subr.bf16.mxu0 %v2719_v11  ;;  %v1321_v11 = vld [vmem:[#allocation8 + $0x390] sm:$0xff] }
 0x11d   : > { %2752 = vmatprep.subr.bf16.mxu1 %v2751_v15  ;;  %v2765_v15 = vpack.c.bf16 %v1272_v1, %v1271_v63  ;;  %v1312_v1 = vld [vmem:[#allocation8 + $0x348] sm:$0xff] }
 0x11f   : > { %2722 = vmatpush3.bf16.msra.mxu0 %v2721_v21  ;;  %v1305_v21 = vld [vmem:[#allocation8 + $0x310] sm:$0xff] }
 0x120   : > { %2754 = vmatpush3.bf16.msra.mxu1 %v2753_v22  ;;  %2724 = vmatprep.subr.bf16.mxu0 %v2723_v23  ;;  %v2799_v22 = vpack.c.bf16 %v1322_v12, %v1321_v11  ;;  %v1306_v23 = vld [vmem:[#allocation8 + $0x318] sm:$0xff]  ;;  %v1313_v11 = vld [vmem:[#allocation8 + $0x350] sm:$0xff] }
 0x121   : > { %2756 = vmatprep.subr.bf16.mxu1 %v2755_v27  ;;  %v1324_v27 = vld [vmem:[#allocation8 + $0x3a8] sm:$0xff]  ;;  %v2801_v0 = vpack.c.bf16 %v1306_v23, %v1305_v21  ;;  %v561_v21 = vsub.s32 4, %v3497_v48 }
 0x122   : > { %v1284_v23 = vld [vmem:[#allocation8 + $0x268] sm:$0xff] }
 0x123   : > { %2726 = vmatpush3.bf16.msra.mxu0 %v2725_v32  ;;  %v1307_v32 = vld [vmem:[#allocation8 + $0x320] sm:$0xff] }
 0x124   : > { %2758 = vmatpush3.bf16.msra.mxu1 %v2757_v33  ;;  %2728 = vmatprep.subr.bf16.mxu0 %v2727_v34  ;;  %v2803_v33 = vpack.c.bf16 %v1324_v27, %v1323_v26  ;;  %v1308_v34 = vld [vmem:[#allocation8 + $0x328] sm:$0xff]  ;;  %v569_v26 = vsub.s32 6, %v3497_v48 }
 0x125   : > { %2760 = vmatprep.subr.bf16.mxu1 %v2759_v38  ;;  %v1326_v38 = vld [vmem:[#allocation8 + $0x3b8] sm:$0xff]  ;;  %v2805_v40 = vpack.c.bf16 %v1308_v34, %v1307_v32  ;;  %v1316_v27 = vld [vmem:[#allocation8 + $0x368] sm:$0xff]  ;;  %v562_v34 = vrot.slane %v3500_v51, %v561_v21 }
 0x126   : > { %v1334_v32 = vld [vmem:[#allocation8 + $0x3f8] sm:$0xff]  ;;  %v2821_v35 = vpack.c.bf16 %v1316_v27, %v1315_v24  ;;  %v1355_v24 = vld [vmem:[#allocation8 + $0x4a0] sm:$0xff] }
 0x127   : > { %2730 = vmatpush3.bf16.msra.mxu0 %v2729_v44  ;;  %v1309_v44 = vld [vmem:[#allocation8 + $0x330] sm:$0xff]  ;;  %v1387_v27 = vld [vmem:[#allocation8 + $0x5a0] sm:$0xff] }
 0x128   : > { %2762 = vmatpush3.bf16.msra.mxu1 %v2761_v45  ;;  %2764 = vmatprep.subr.bf16.mxu0 %v2763_v46  ;;  %v2807_v45 = vpack.c.bf16 %v1326_v38, %v1325_v37  ;;  %v1310_v46 = vld [vmem:[#allocation8 + $0x338] sm:$0xff]  ;;  %v1285_v37 = vld [vmem:[#allocation8 + $0x270] sm:$0xff] }
 0x129   : > { %2796 = vmatprep.subr.bf16.mxu1 %v2795_v47  ;;  %v1295_v47 = vld [vmem:[#allocation8 + $0x2c0] sm:$0xff]  ;;  %v1286_v38 = vld [vmem:[#allocation8 + $0x278] sm:$0xff] }
 0x17d   : > { %v689_v59 = vpop.f32.mrb[0].mxu0 }
 0x17e   : > { %v690_v60 = vadd.f32 %v689_v59, %v546_v55  ;;  %v760_v61 = vpop.f32.mrb[0].mxu1  ;;  %v691_v62 = vpop.f32.mrb[1].mxu0  ;;  %v1327_v55 = vld [vmem:[#allocation8 + $0x3c0] sm:$0xff]  ;;  %v2779_v59 = vpack.c.bf16 %v1296_v49, %v1295_v47  ;;  %v1384_v49 = vld [vmem:[#allocation8 + $0x588] sm:$0xff] }
 0x17f   : > { %v761_v3 = vadd.f32 %v760_v61, %v554_v56  ;;  %v692_v4 = vadd.f32 %v691_v62, %v550_v57  ;;  %v762_v5 = vpop.f32.mrb[1].mxu1  ;;  %v1328_v56 = vld [vmem:[#allocation8 + $0x3c8] sm:$0xff]  ;;  %v2777_v57 = vpack.c.bf16 %v1278_v43, %v1277_v42  ;;  %v1311_v62 = vld [vmem:[#allocation8 + $0x340] sm:$0xff]  ;;  %v2823_v42 = vpack.c.bf16 %v1334_v32, %v1333_v31  ;;  %v1318_v43 = vld [vmem:[#allocation8 + $0x378] sm:$0xff] }
 0x180   : > { %v1191_v9 = vmax.f32 %v690_v60, 0.0  ;;  %v763_v10 = vadd.f32 %v762_v5, %v558_v58  ;;  %v2809_v58 = vpack.c.bf16 %v1310_v46, %v1309_v44  ;;  %v1279_v60 = vld [vmem:[#allocation8 + $0x240] sm:$0xff]  ;;  %v1280_v61 = vld [vmem:[#allocation8 + $0x248] sm:$0xff]  ;;  %v2811_v63 = vpack.c.bf16 %v1328_v56, %v1327_v55  ;;  %v1330_v5 = vld [vmem:[#allocation8 + $0x3d8] sm:$0xff] }
 0x181   : > { %v1193_v13 = vmax.f32 %v761_v3, 0.0  ;;  %v1192_v14 = vmax.f32 %v692_v4, 0.0  ;;  %v1298_v3 = vld [vmem:[#allocation8 + $0x2d8] sm:$0xff]  ;;  %v1329_v4 = vld [vmem:[#allocation8 + $0x3d0] sm:$0xff]  ;;  %v2781_v6 = vpack.c.bf16 %v1280_v61, %v1279_v60  ;;  %v2813_v7 = vpack.c.bf16 %v1312_v1, %v1311_v62  ;;  %v1351_v44 = vld [vmem:[#allocation8 + $0x480] sm:$0xff] }
 0x182   : > { %v1194_v16 = vmax.f32 %v763_v10, 0.0  ;;  %v2783_v8 = vpack.c.bf16 %v1298_v3, %v1297_v2  ;;  %v1282_v10 = vld [vmem:[#allocation8 + $0x258] sm:$0xff]  ;;  %v2815_v12 = vpack.c.bf16 %v1330_v5, %v1329_v4  ;;  %v574_v46 = vrot.slane %v3500_v51, %v573_v30  ;;  %v1383_v47 = vld [vmem:[#allocation8 + $0x580] sm:$0xff]  ;;  %v1368_v5 = vld [vmem:[#allocation8 + $0x508] sm:$0xff] }
 0x183   : > { %1534 = vmatprep.mubr.f32.mxu0 %v1192_v14  ;;  %v1299_v14 = vld [vmem:[#allocation8 + $0x2e0] sm:$0xff]  ;;  %v2793_v56 = vpack.c.bf16 %v1286_v38, %v1285_v37  ;;  %v1372_v37 = vld [vmem:[#allocation8 + $0x528] sm:$0xff]  ;;  %v1357_v38 = vld [vmem:[#allocation8 + $0x4b0] sm:$0xff] }
 0x184   : > { %1604 = vmatprep.mubr.f32.mxu1 %v1194_v16  ;;  %1535 = vmatmul.mubr.f32.vlgmr.msra.gmra.mrb[8].mxu0 %v1191_v9  ;;  %v1281_v9 = vld [vmem:[#allocation8 + $0x250] sm:$0xff]  ;;  %v1331_v16 = vld [vmem:[#allocation8 + $0x3e0] sm:$0xff] }
 0x185   : > { %1605 = vmatmul.mubr.f32.vlgmr.msra.gmra.mrb[8].mxu1 %v1193_v13  ;;  %2766 = vmatpush3.bf16.msra.mxu0 %v2765_v15  ;;  %v1314_v13 = vld [vmem:[#allocation8 + $0x358] sm:$0xff]  ;;  %v1300_v15 = vld [vmem:[#allocation8 + $0x2e8] sm:$0xff]  ;;  %v1335_v62 = vld [vmem:[#allocation8 + $0x400] sm:$0xff] }
 0x186   : > { %2798 = vmatpush3.bf16.msra.mxu1 %v2797_v17  ;;  %2768 = vmatprep.subr.bf16.mxu0 %v2767_v18  ;;  %v1332_v17 = vld [vmem:[#allocation8 + $0x3e8] sm:$0xff]  ;;  %v2785_v18 = vpack.c.bf16 %v1282_v10, %v1281_v9  ;;  %v2817_v19 = vpack.c.bf16 %v1314_v13, %v1313_v11  ;;  %v2787_v20 = vpack.c.bf16 %v1300_v15, %v1299_v14  ;;  %v1367_v1 = vld [vmem:[#allocation8 + $0x500] sm:$0xff]  ;;  %v1385_v10 = vld [vmem:[#allocation8 + $0x590] sm:$0xff] }
 0x187   : > { %2800 = vmatprep.subr.bf16.mxu1 %v2799_v22  ;;  %v1283_v22 = vld [vmem:[#allocation8 + $0x260] sm:$0xff]  ;;  %v2819_v25 = vpack.c.bf16 %v1332_v17, %v1331_v16  ;;  %v1386_v11 = vld [vmem:[#allocation8 + $0x598] sm:$0xff]  ;;  %v2861_v16 = vpack.c.bf16 %v1368_v5, %v1367_v1  ;;  %v1344_v1 = vld [vmem:[#allocation8 + $0x448] sm:$0xff] }
 0x188   : > { %v1362_v5 = vld [vmem:[#allocation8 + $0x4d8] sm:$0xff] }
 0x189   : > { %2770 = vmatpush3.bf16.msra.mxu0 %v2769_v28  ;;  %v565_v28 = vsub.s32 5, %v3497_v48 }
 0x18a   : > { %2802 = vmatpush3.bf16.msra.mxu1 %v2801_v0  ;;  %2772 = vmatprep.subr.bf16.mxu0 %v2771_v29  ;;  %v1301_v0 = vld [vmem:[#allocation8 + $0x2f0] sm:$0xff]  ;;  %v1302_v29 = vld [vmem:[#allocation8 + $0x2f8] sm:$0xff] }
 0x18b   : > { %2804 = vmatprep.subr.bf16.mxu1 %v2803_v33  ;;  %v2789_v33 = vpack.c.bf16 %v1284_v23, %v1283_v22  ;;  %v2791_v36 = vpack.c.bf16 %v1302_v29, %v1301_v0  ;;  %v2863_v22 = vpack.c.bf16 %v1386_v11, %v1385_v10  ;;  %v1370_v23 = vld [vmem:[#allocation8 + $0x518] sm:$0xff]  ;;  %v1388_v0 = vld [vmem:[#allocation8 + $0x5a8] sm:$0xff]  ;;  %v1345_v11 = vld [vmem:[#allocation8 + $0x450] sm:$0xff] }
 0x18d   : > { %2774 = vmatpush3.bf16.msra.mxu0 %v2773_v39  ;;  %v1317_v39 = vld [vmem:[#allocation8 + $0x370] sm:$0xff] }
 0x18e   : > { %2806 = vmatpush3.bf16.msra.mxu1 %v2805_v40  ;;  %2776 = vmatprep.subr.bf16.mxu0 %v2775_v41  ;;  %v570_v40 = vrot.slane %v3500_v51, %v569_v26  ;;  %v566_v41 = vrot.slane %v3500_v51, %v565_v28  ;;  %v2825_v60 = vpack.c.bf16 %v1318_v43, %v1317_v39  ;;  %v1358_v39 = vld [vmem:[#allocation8 + $0x4b8] sm:$0xff] }
 0x18f   : > { %2808 = vmatprep.subr.bf16.mxu1 %v2807_v45  ;;  %v1352_v45 = vld [vmem:[#allocation8 + $0x488] sm:$0xff]  ;;  %v2859_v51 = vpack.c.bf16 %v1384_v49, %v1383_v47  ;;  %v1373_v47 = vld [vmem:[#allocation8 + $0x530] sm:$0xff] }
 0x190   : > { %v2827_v61 = vpack.c.bf16 %v1352_v45, %v1351_v44  ;;  %v2839_v44 = vpack.c.bf16 %v1358_v39, %v1357_v38  ;;  %v1341_v45 = vld [vmem:[#allocation8 + $0x430] sm:$0xff] }
 0x191   : > { %2778 = vmatpush3.bf16.msra.mxu0 %v2777_v57 }
 0x192   : > { %2810 = vmatpush3.bf16.msra.mxu1 %v2809_v58  ;;  %2780 = vmatprep.subr.bf16.mxu0 %v2779_v59 }
 0x193   : > { %2812 = vmatprep.subr.bf16.mxu1 %v2811_v63  ;;  %v1336_v63 = vld [vmem:[#allocation8 + $0x408] sm:$0xff] }
 0x194   : > { %v2829_v14 = vpack.c.bf16 %v1336_v63, %v1335_v62  ;;  %v1343_v63 = vld [vmem:[#allocation8 + $0x440] sm:$0xff] }
 0x195   : > { %2782 = vmatpush3.bf16.msra.mxu0 %v2781_v6  ;;  %v1353_v6 = vld [vmem:[#allocation8 + $0x490] sm:$0xff] }
 0x196   : > { %2814 = vmatpush3.bf16.msra.mxu1 %v2813_v7  ;;  %2784 = vmatprep.subr.bf16.mxu0 %v2783_v8  ;;  %v1354_v7 = vld [vmem:[#allocation8 + $0x498] sm:$0xff] }
 0x197   : > { %2816 = vmatprep.subr.bf16.mxu1 %v2815_v12  ;;  %v2831_v17 = vpack.c.bf16 %v1354_v7, %v1353_v6  ;;  %v1393_v6 = vld [vmem:[#allocation8 + $0x5d0] sm:$0xff]  ;;  %v1394_v7 = vld [vmem:[#allocation8 + $0x5d8] sm:$0xff] }
 0x199   : > { %2786 = vmatpush3.bf16.msra.mxu0 %v2785_v18  ;;  %v1337_v18 = vld [vmem:[#allocation8 + $0x410] sm:$0xff] }
 0x19a   : > { %2818 = vmatpush3.bf16.msra.mxu1 %v2817_v19  ;;  %2788 = vmatprep.subr.bf16.mxu0 %v2787_v20  ;;  %v1338_v19 = vld [vmem:[#allocation8 + $0x418] sm:$0xff]  ;;  %v1369_v20 = vld [vmem:[#allocation8 + $0x510] sm:$0xff] }
 0x19b   : > { %2820 = vmatprep.subr.bf16.mxu1 %v2819_v25  ;;  %v1356_v25 = vld [vmem:[#allocation8 + $0x4a8] sm:$0xff]  ;;  %v2833_v29 = vpack.c.bf16 %v1338_v19, %v1337_v18  ;;  %v2865_v31 = vpack.c.bf16 %v1370_v23, %v1369_v20  ;;  %v1395_v18 = vld [vmem:[#allocation8 + $0x5e0] sm:$0xff] }
 0x19c   : > { %v2835_v32 = vpack.c.bf16 %v1356_v25, %v1355_v24  ;;  %v1396_v19 = vld [vmem:[#allocation8 + $0x5e8] sm:$0xff]  ;;  %v1347_v25 = vld [vmem:[#allocation8 + $0x460] sm:$0xff] }
 0x19d   : > { %v831_v55 = vpop.f32.mrb[2].mxu0  ;;  %2790 = vmatpush3.bf16.msra.mxu0 %v2789_v33  ;;  %v1339_v33 = vld [vmem:[#allocation8 + $0x420] sm:$0xff] }
 0x19e   : > { %v832_v57 = vadd.f32 %v831_v55, %v562_v34  ;;  %v902_v58 = vpop.f32.mrb[2].mxu1  ;;  %2822 = vmatpush3.bf16.msra.mxu1 %v2821_v35  ;;  %v833_v59 = vpop.f32.mrb[3].mxu0  ;;  %2792 = vmatprep.subr.bf16.mxu0 %v2791_v36  ;;  %v1340_v34 = vld [vmem:[#allocation8 + $0x428] sm:$0xff]  ;;  %v1371_v35 = vld [vmem:[#allocation8 + $0x520] sm:$0xff]  ;;  %v2867_v36 = vpack.c.bf16 %v1388_v0, %v1387_v27  ;;  %v1374_v55 = vld [vmem:[#allocation8 + $0x538] sm:$0xff] }
 0x19f   : > { %v903_v2 = vadd.f32 %v902_v58, %v570_v40  ;;  %v834_v3 = vadd.f32 %v833_v59, %v566_v41  ;;  %v904_v4 = vpop.f32.mrb[3].mxu1  ;;  %2824 = vmatprep.subr.bf16.mxu1 %v2823_v42  ;;  %v1389_v40 = vld [vmem:[#allocation8 + $0x5b0] sm:$0xff]  ;;  %v1390_v41 = vld [vmem:[#allocation8 + $0x5b8] sm:$0xff]  ;;  %v2837_v42 = vpack.c.bf16 %v1340_v34, %v1339_v33  ;;  %v2869_v43 = vpack.c.bf16 %v1372_v37, %v1371_v35  ;;  %v1391_v58 = vld [vmem:[#allocation8 + $0x5c0] sm:$0xff] }
 0x1a0   : > { %v1195_v8 = vmax.f32 %v832_v57, 0.0  ;;  %v905_v9 = vadd.f32 %v904_v4, %v574_v46  ;;  %v1342_v46 = vld [vmem:[#allocation8 + $0x438] sm:$0xff]  ;;  %v2871_v49 = vpack.c.bf16 %v1390_v41, %v1389_v40  ;;  %v1360_v57 = vld [vmem:[#allocation8 + $0x4c8] sm:$0xff]  ;;  %v1379_v0 = vld [vmem:[#allocation8 + $0x560] sm:$0xff] }
 0x1a1   : > { %v1197_v12 = vmax.f32 %v903_v2, 0.0  ;;  %v1196_v13 = vmax.f32 %v834_v3, 0.0  ;;  %2794 = vmatpush3.bf16.msra.mxu0 %v2793_v56  ;;  %v1359_v56 = vld [vmem:[#allocation8 + $0x4c0] sm:$0xff]  ;;  %v1392_v59 = vld [vmem:[#allocation8 + $0x5c8] sm:$0xff]  ;;  %v1366_v33 = vld [vmem:[#allocation8 + $0x4f8] sm:$0xff] }
 0x1a2   : > { %v1198_v15 = vmax.f32 %v905_v9, 0.0  ;;  %2826 = vmatpush3.bf16.msra.mxu1 %v2825_v60  ;;  %2828 = vmatprep.subr.bf16.mxu0 %v2827_v61  ;;  %v2841_v60 = vpack.c.bf16 %v1342_v46, %v1341_v45  ;;  %v2873_v61 = vpack.c.bf16 %v1374_v55, %v1373_v47  ;;  %v2843_v62 = vpack.c.bf16 %v1360_v57, %v1359_v56  ;;  %v1375_v2 = vld [vmem:[#allocation8 + $0x540] sm:$0xff]  ;;  %v1376_v4 = vld [vmem:[#allocation8 + $0x548] sm:$0xff]  ;;  %v1397_v34 = vld [vmem:[#allocation8 + $0x5f0] sm:$0xff] }
 0x1a3   : > { %1674 = vmatprep.mubr.f32.mxu0 %v1196_v13  ;;  %2860 = vmatprep.subr.bf16.mxu1 %v2859_v51  ;;  %v2875_v3 = vpack.c.bf16 %v1392_v59, %v1391_v58  ;;  %v1361_v51 = vld [vmem:[#allocation8 + $0x4d0] sm:$0xff]  ;;  %v2877_v9 = vpack.c.bf16 %v1376_v4, %v1375_v2  ;;  %v1348_v27 = vld [vmem:[#allocation8 + $0x468] sm:$0xff]  ;;  %v1398_v35 = vld [vmem:[#allocation8 + $0x5f8] sm:$0xff] }
 0x1a4   : > { %1744 = vmatprep.mubr.f32.mxu1 %v1198_v15  ;;  %1675 = vmatmul.mubr.f32.vlgmr.msra.gmra.mrb[10].mxu0 %v1195_v8  ;;  %v2845_v8 = vpack.c.bf16 %v1344_v1, %v1343_v63  ;;  %v2847_v10 = vpack.c.bf16 %v1362_v5, %v1361_v51  ;;  %v1377_v13 = vld [vmem:[#allocation8 + $0x550] sm:$0xff]  ;;  %v1378_v15 = vld [vmem:[#allocation8 + $0x558] sm:$0xff]  ;;  %v2887_v45 = vpack.c.bf16 %v1398_v35, %v1397_v34  ;;  %v1415_v47 = vld [vmem:[#allocation8 + $0x680] sm:$0xff] }
 0x1a5   : > { %1745 = vmatmul.mubr.f32.vlgmr.msra.gmra.mrb[10].mxu1 %v1197_v12  ;;  %2830 = vmatpush3.bf16.msra.mxu0 %v2829_v14  ;;  %v1346_v12 = vld [vmem:[#allocation8 + $0x458] sm:$0xff]  ;;  %v2879_v14 = vpack.c.bf16 %v1394_v7, %v1393_v6  ;;  %v2881_v23 = vpack.c.bf16 %v1378_v15, %v1377_v13  ;;  %v1349_v40 = vld [vmem:[#allocation8 + $0x470] sm:$0xff]  ;;  %v1447_v55 = vld [vmem:[#allocation8 + $0x780] sm:$0xff] }
 0x1a6   : > { %2862 = vmatpush3.bf16.msra.mxu1 %v2861_v16  ;;  %2832 = vmatprep.subr.bf16.mxu0 %v2831_v17  ;;  %v1363_v16 = vld [vmem:[#allocation8 + $0x4e0] sm:$0xff]  ;;  %v1364_v17 = vld [vmem:[#allocation8 + $0x4e8] sm:$0xff]  ;;  %v2849_v20 = vpack.c.bf16 %v1346_v12, %v1345_v11  ;;  %v1350_v41 = vld [vmem:[#allocation8 + $0x478] sm:$0xff] }
 0x1a7   : > { %2864 = vmatprep.subr.bf16.mxu1 %v2863_v22  ;;  %v3533_v22 = vld [vmem:[#allocation7 + $0x8] sm:$0xff]  ;;  %v2851_v24 = vpack.c.bf16 %v1364_v17, %v1363_v16  ;;  %v1448_v56 = vld [vmem:[#allocation8 + $0x788] sm:$0xff]  ;;  %v2857_v58 = vpack.c.bf16 %v1350_v41, %v1349_v40  ;;  %v1431_v1 = vld [vmem:[#allocation8 + $0x700] sm:$0xff] }
 0x1a8   : > { %v578_v37 = vrot.slane %v3533_v22, %v545_v50  ;;  %v1382_v46 = vld [vmem:[#allocation8 + $0x578] sm:$0xff]  ;;  %v590_v50 = vrot.slane %v3533_v22, %v557_v54  ;;  %v1400_v63 = vld [vmem:[#allocation8 + $0x608] sm:$0xff]  ;;  %v2923_v54 = vpack.c.bf16 %v1448_v56, %v1447_v55  ;;  %v1417_v5 = vld [vmem:[#allocation8 + $0x690] sm:$0xff] }
 0x1a9   : > { %2834 = vmatpush3.bf16.msra.mxu0 %v2833_v29  ;;  %v2883_v29 = vpack.c.bf16 %v1396_v19, %v1395_v18  ;;  %v1432_v51 = vld [vmem:[#allocation8 + $0x708] sm:$0xff]  ;;  %v1418_v6 = vld [vmem:[#allocation8 + $0x698] sm:$0xff]  ;;  %v1401_v17 = vld [vmem:[#allocation8 + $0x610] sm:$0xff] }
 0x1aa   : > { %2866 = vmatpush3.bf16.msra.mxu1 %v2865_v31  ;;  %2836 = vmatprep.subr.bf16.mxu0 %v2835_v32  ;;  %v1380_v31 = vld [vmem:[#allocation8 + $0x568] sm:$0xff]  ;;  %v1365_v32 = vld [vmem:[#allocation8 + $0x4f0] sm:$0xff]  ;;  %v2925_v15 = vpack.c.bf16 %v1432_v51, %v1431_v1  ;;  %v2895_v16 = vpack.c.bf16 %v1418_v6, %v1417_v5  ;;  %v1402_v18 = vld [vmem:[#allocation8 + $0x618] sm:$0xff] }
 0x1ab   : > { %2868 = vmatprep.subr.bf16.mxu1 %v2867_v36  ;;  %v2853_v36 = vpack.c.bf16 %v1348_v27, %v1347_v25  ;;  %v2885_v38 = vpack.c.bf16 %v1380_v31, %v1379_v0  ;;  %v2855_v39 = vpack.c.bf16 %v1366_v33, %v1365_v32  ;;  %v1433_v19 = vld [vmem:[#allocation8 + $0x710] sm:$0xff]  ;;  %v1420_v25 = vld [vmem:[#allocation8 + $0x6a8] sm:$0xff]  ;;  %v1451_v27 = vld [vmem:[#allocation8 + $0x7a0] sm:$0xff] }
 0x1ac   : > { %v1452_v0 = vld [vmem:[#allocation8 + $0x7a8] sm:$0xff]  ;;  %v1403_v33 = vld [vmem:[#allocation8 + $0x620] sm:$0xff]  ;;  %v1453_v40 = vld [vmem:[#allocation8 + $0x7b0] sm:$0xff] }
 0x1ad   : > { %2838 = vmatpush3.bf16.msra.mxu0 %v2837_v42  ;;  %v1381_v42 = vld [vmem:[#allocation8 + $0x570] sm:$0xff]  ;;  %v1404_v34 = vld [vmem:[#allocation8 + $0x628] sm:$0xff]  ;;  %v1435_v35 = vld [vmem:[#allocation8 + $0x720] sm:$0xff] }
 0x1ae   : > { %2870 = vmatpush3.bf16.msra.mxu1 %v2869_v43  ;;  %2840 = vmatprep.subr.bf16.mxu0 %v2839_v44  ;;  %v586_v43 = vrot.slane %v3533_v22, %v553_v52  ;;  %v582_v44 = vrot.slane %v3533_v22, %v549_v53  ;;  %v1454_v41 = vld [vmem:[#allocation8 + $0x7b8] sm:$0xff]  ;;  %v1423_v55 = vld [vmem:[#allocation8 + $0x6c0] sm:$0xff]  ;;  %v1424_v56 = vld [vmem:[#allocation8 + $0x6c8] sm:$0xff] }
 0x1af   : > { %2872 = vmatprep.subr.bf16.mxu1 %v2871_v49  ;;  %v1416_v49 = vld [vmem:[#allocation8 + $0x688] sm:$0xff] }
 0x1b0   : > { %v2891_v53 = vpack.c.bf16 %v1416_v49, %v1415_v47  ;;  %v1437_v47 = vld [vmem:[#allocation8 + $0x730] sm:$0xff]  ;;  %v2935_v49 = vpack.c.bf16 %v1454_v41, %v1453_v40  ;;  %v1440_v1 = vld [vmem:[#allocation8 + $0x748] sm:$0xff] }
 0x1b1   : > { %2842 = vmatpush3.bf16.msra.mxu0 %v2841_v60  ;;  %v1445_v41 = vld [vmem:[#allocation8 + $0x770] sm:$0xff] }
 0x1b2   : > { %2874 = vmatpush3.bf16.msra.mxu1 %v2873_v61  ;;  %2844 = vmatprep.subr.bf16.mxu0 %v2843_v62  ;;  %v2889_v61 = vpack.c.bf16 %v1382_v46, %v1381_v42  ;;  %v1399_v62 = vld [vmem:[#allocation8 + $0x600] sm:$0xff]  ;;  %v2901_v42 = vpack.c.bf16 %v1404_v34, %v1403_v33  ;;  %v1406_v46 = vld [vmem:[#allocation8 + $0x638] sm:$0xff]  ;;  %v594_v33 = vrot.slane %v3533_v22, %v561_v21 }
 0x1b3   : > { %2876 = vmatprep.subr.bf16.mxu1 %v2875_v3  ;;  %v2893_v13 = vpack.c.bf16 %v1400_v63, %v1399_v62  ;;  %v1439_v62 = vld [vmem:[#allocation8 + $0x740] sm:$0xff]  ;;  %v606_v21 = vrot.slane %v3533_v22, %v573_v30 }
 0x1b4   : > { %v2941_v5 = vpack.c.bf16 %v1440_v1, %v1439_v62 }
 0x1b5   : > { %2846 = vmatpush3.bf16.msra.mxu0 %v2845_v8 }
 0x1b6   : > { %2878 = vmatpush3.bf16.msra.mxu1 %v2877_v9  ;;  %2848 = vmatprep.subr.bf16.mxu0 %v2847_v10  ;;  %v1449_v9 = vld [vmem:[#allocation8 + $0x790] sm:$0xff]  ;;  %v1450_v10 = vld [vmem:[#allocation8 + $0x798] sm:$0xff] }
 0x1b7   : > { %2880 = vmatprep.subr.bf16.mxu1 %v2879_v14 }
 0x1b9   : > { %2850 = vmatpush3.bf16.msra.mxu0 %v2849_v20  ;;  %v2927_v20 = vpack.c.bf16 %v1450_v10, %v1449_v9  ;;  %v1441_v9 = vld [vmem:[#allocation8 + $0x750] sm:$0xff] }
 0x1ba   : > { %2882 = vmatpush3.bf16.msra.mxu1 %v2881_v23  ;;  %2852 = vmatprep.subr.bf16.mxu0 %v2851_v24  ;;  %v1434_v23 = vld [vmem:[#allocation8 + $0x718] sm:$0xff]  ;;  %v1419_v24 = vld [vmem:[#allocation8 + $0x6a0] sm:$0xff] }
 0x1bb   : > { %2884 = vmatprep.subr.bf16.mxu1 %v2883_v29  ;;  %v2897_v29 = vpack.c.bf16 %v1402_v18, %v1401_v17  ;;  %v2929_v31 = vpack.c.bf16 %v1434_v23, %v1433_v19  ;;  %v2899_v32 = vpack.c.bf16 %v1420_v25, %v1419_v24  ;;  %v1411_v19 = vld [vmem:[#allocation8 + $0x660] sm:$0xff]  ;;  %v1444_v25 = vld [vmem:[#allocation8 + $0x768] sm:$0xff] }
 0x1bc   : > { %v1443_v23 = vld [vmem:[#allocation8 + $0x760] sm:$0xff] }
 0x1bd   : > { %v973_v57 = vpop.f32.mrb[4].mxu0  ;;  %2854 = vmatpush3.bf16.msra.mxu0 %v2853_v36  ;;  %v2931_v36 = vpack.c.bf16 %v1452_v0, %v1451_v27  ;;  %v1429_v27 = vld [vmem:[#allocation8 + $0x6f0] sm:$0xff]  ;;  %v1430_v0 = vld [vmem:[#allocation8 + $0x6f8] sm:$0xff]  ;;  %v2949_v34 = vpack.c.bf16 %v1444_v25, %v1443_v23 }
 0x1be   : > { %v974_v59 = vadd.f32 %v973_v57, %v578_v37  ;;  %v1044_v60 = vpop.f32.mrb[4].mxu1  ;;  %2886 = vmatpush3.bf16.msra.mxu1 %v2885_v38  ;;  %v975_v52 = vpop.f32.mrb[5].mxu0  ;;  %2856 = vmatprep.subr.bf16.mxu0 %v2855_v39  ;;  %v1436_v37 = vld [vmem:[#allocation8 + $0x728] sm:$0xff]  ;;  %v1421_v38 = vld [vmem:[#allocation8 + $0x6b0] sm:$0xff]  ;;  %v1422_v39 = vld [vmem:[#allocation8 + $0x6b8] sm:$0xff] }
 0x1bf   : > { %v1045_v2 = vadd.f32 %v1044_v60, %v586_v43  ;;  %v976_v3 = vadd.f32 %v975_v52, %v582_v44  ;;  %v1046_v4 = vpop.f32.mrb[5].mxu1  ;;  %2888 = vmatprep.subr.bf16.mxu1 %v2887_v45  ;;  %v2933_v43 = vpack.c.bf16 %v1436_v37, %v1435_v35  ;;  %v2903_v44 = vpack.c.bf16 %v1422_v39, %v1421_v38  ;;  %v1405_v45 = vld [vmem:[#allocation8 + $0x630] sm:$0xff]  ;;  %v1455_v57 = vld [vmem:[#allocation8 + $0x7c0] sm:$0xff]  ;;  %v1414_v37 = vld [vmem:[#allocation8 + $0x678] sm:$0xff] }
 0x1c0   : > { %v1199_v7 = vmax.f32 %v974_v59, 0.0  ;;  %v1047_v8 = vadd.f32 %v1046_v4, %v590_v50  ;;  %v1438_v50 = vld [vmem:[#allocation8 + $0x738] sm:$0xff]  ;;  %v2905_v59 = vpack.c.bf16 %v1406_v46, %v1405_v45  ;;  %v2907_v52 = vpack.c.bf16 %v1424_v56, %v1423_v55  ;;  %v1457_v4 = vld [vmem:[#allocation8 + $0x7d0] sm:$0xff] }
 0x1c1   : > { %v1201_v11 = vmax.f32 %v1045_v2, 0.0  ;;  %v1200_v12 = vmax.f32 %v976_v3, 0.0  ;;  %2858 = vmatpush3.bf16.msra.mxu0 %v2857_v58  ;;  %v1456_v58 = vld [vmem:[#allocation8 + $0x7c8] sm:$0xff]  ;;  %v2937_v60 = vpack.c.bf16 %v1438_v50, %v1437_v47  ;;  %v1425_v2 = vld [vmem:[#allocation8 + $0x6d0] sm:$0xff]  ;;  %v1426_v3 = vld [vmem:[#allocation8 + $0x6d8] sm:$0xff]  ;;  %v2919_v35 = vpack.c.bf16 %v1430_v0, %v1429_v27 }
 0x1c2   : > { %v1202_v14 = vmax.f32 %v1047_v8, 0.0  ;;  %2890 = vmatpush3.bf16.msra.mxu1 %v2889_v61  ;;  %2892 = vmatprep.subr.bf16.mxu0 %v2891_v53  ;;  %v1407_v61 = vld [vmem:[#allocation8 + $0x640] sm:$0xff]  ;;  %v1408_v53 = vld [vmem:[#allocation8 + $0x648] sm:$0xff]  ;;  %v2939_v63 = vpack.c.bf16 %v1456_v58, %v1455_v57  ;;  %v2911_v6 = vpack.c.bf16 %v1426_v3, %v1425_v2  ;;  %v1410_v8 = vld [vmem:[#allocation8 + $0x658] sm:$0xff]  ;;  %v602_v38 = vrot.slane %v3533_v22, %v569_v26 }
 0x1c3   : > { %1814 = vmatprep.mubr.f32.mxu0 %v1200_v12  ;;  %2924 = vmatprep.subr.bf16.mxu1 %v2923_v54  ;;  %v1458_v54 = vld [vmem:[#allocation8 + $0x7d8] sm:$0xff]  ;;  %v2909_v51 = vpack.c.bf16 %v1408_v53, %v1407_v61  ;;  %v1427_v12 = vld [vmem:[#allocation8 + $0x6e0] sm:$0xff]  ;;  %v598_v39 = vrot.slane %v3533_v22, %v565_v28 }
 0x1c4   : > { %1884 = vmatprep.mubr.f32.mxu1 %v1202_v14  ;;  %1815 = vmatmul.mubr.f32.vlgmr.msra.gmra.mrb[12].mxu0 %v1199_v7  ;;  %v1409_v7 = vld [vmem:[#allocation8 + $0x650] sm:$0xff]  ;;  %v2943_v10 = vpack.c.bf16 %v1458_v54, %v1457_v4  ;;  %v1459_v14 = vld [vmem:[#allocation8 + $0x7e0] sm:$0xff] }
 0x1c5   : > { %1885 = vmatmul.mubr.f32.vlgmr.msra.gmra.mrb[12].mxu1 %v1201_v11  ;;  %2894 = vmatpush3.bf16.msra.mxu0 %v2893_v13  ;;  %v1442_v11 = vld [vmem:[#allocation8 + $0x758] sm:$0xff]  ;;  %v1428_v13 = vld [vmem:[#allocation8 + $0x6e8] sm:$0xff] }
 0x1c6   : > { %2926 = vmatpush3.bf16.msra.mxu1 %v2925_v15  ;;  %2896 = vmatprep.subr.bf16.mxu0 %v2895_v16  ;;  %v1460_v15 = vld [vmem:[#allocation8 + $0x7e8] sm:$0xff]  ;;  %v2913_v16 = vpack.c.bf16 %v1410_v8, %v1409_v7  ;;  %v2945_v17 = vpack.c.bf16 %v1442_v11, %v1441_v9  ;;  %v2915_v18 = vpack.c.bf16 %v1428_v13, %v1427_v12 }
 0x1c7   : > { %2928 = vmatprep.subr.bf16.mxu1 %v2927_v20  ;;  %v1412_v20 = vld [vmem:[#allocation8 + $0x668] sm:$0xff]  ;;  %v2947_v24 = vpack.c.bf16 %v1460_v15, %v1459_v14 }
 0x1c9   : > { %2898 = vmatpush3.bf16.msra.mxu0 %v2897_v29  ;;  %v1461_v29 = vld [vmem:[#allocation8 + $0x7f0] sm:$0xff] }
 0x1ca   : > { %2930 = vmatpush3.bf16.msra.mxu1 %v2929_v31  ;;  %2900 = vmatprep.subr.bf16.mxu0 %v2899_v32  ;;  %v1462_v31 = vld [vmem:[#allocation8 + $0x7f8] sm:$0xff]  ;;  %v2917_v32 = vpack.c.bf16 %v1412_v20, %v1411_v19 }
 0x1cb   : > { %2932 = vmatprep.subr.bf16.mxu1 %v2931_v36  ;;  %v1413_v36 = vld [vmem:[#allocation8 + $0x670] sm:$0xff]  ;;  %v2951_v40 = vpack.c.bf16 %v1462_v31, %v1461_v29 }
 0x1cd   : > { %2902 = vmatpush3.bf16.msra.mxu0 %v2901_v42  ;;  %v1446_v42 = vld [vmem:[#allocation8 + $0x778] sm:$0xff] }
 0x1ce   : > { %2934 = vmatpush3.bf16.msra.mxu1 %v2933_v43  ;;  %2904 = vmatprep.subr.bf16.mxu0 %v2903_v44  ;;  %v2921_v44 = vpack.c.bf16 %v1414_v37, %v1413_v36  ;;  %v2953_v26 = vpack.c.bf16 %v1446_v42, %v1445_v41 }
 0x1cf   : > { %2936 = vmatprep.subr.bf16.mxu1 %v2935_v49 }
 0x1d1   : > { %2906 = vmatpush3.bf16.msra.mxu0 %v2905_v59  ;;  %v2158_v59 = vld [vmem:[%s3616_s4] ss:$0 sm:$0xff] }
 0x1d2   : > { %2938 = vmatpush3.bf16.msra.mxu1 %v2937_v60  ;;  %2908 = vmatprep.subr.bf16.mxu0 %v2907_v52 }
 0x1d3   : > { %2940 = vmatprep.subr.bf16.mxu1 %v2939_v63 }
 0x1d5   : > { %2910 = vmatpush3.bf16.msra.mxu0 %v2909_v51 }
 0x1d6   : > { %2942 = vmatpush3.bf16.msra.mxu1 %v2941_v5  ;;  %2912 = vmatprep.subr.bf16.mxu0 %v2911_v6 }
 0x1d7   : > { %2944 = vmatprep.subr.bf16.mxu1 %v2943_v10 }
 0x1d9   : > { %2914 = vmatpush3.bf16.msra.mxu0 %v2913_v16 }
 0x1da   : > { %2946 = vmatpush3.bf16.msra.mxu1 %v2945_v17  ;;  %2916 = vmatprep.subr.bf16.mxu0 %v2915_v18 }
 0x1db   : > { %2948 = vmatprep.subr.bf16.mxu1 %v2947_v24 }
 0x1dd   : > { %v1115_v43 = vpop.f32.mrb[6].mxu0  ;;  %2918 = vmatpush3.bf16.msra.mxu0 %v2917_v32 }
 0x1de   : > { %v1116_v45 = vadd.f32 %v1115_v43, %v594_v33  ;;  %v1186_v46 = vpop.f32.mrb[6].mxu1  ;;  %2950 = vmatpush3.bf16.msra.mxu1 %v2949_v34  ;;  %v1117_v47 = vpop.f32.mrb[7].mxu0  ;;  %2920 = vmatprep.subr.bf16.mxu0 %v2919_v35 }
 0x1df   : > { %v1187_v49 = vadd.f32 %v1186_v46, %v602_v38  ;;  %v1118_v50 = vadd.f32 %v1117_v47, %v598_v39  ;;  %v1188_v55 = vpop.f32.mrb[7].mxu1  ;;  %2952 = vmatprep.subr.bf16.mxu1 %v2951_v40 }
 0x1e0   : > { %v1189_v28 = vadd.f32 %v1188_v55, %v606_v21  ;;  %v1203_v48 = vmax.f32 %v1116_v45, 0.0 }
 0x1e1   : > { %v1205_v56 = vmax.f32 %v1187_v49, 0.0  ;;  %v1204_v57 = vmax.f32 %v1118_v50, 0.0  ;;  %2922 = vmatpush3.bf16.msra.mxu0 %v2921_v44 }
 0x1e2   : > { %v1206_v58 = vmax.f32 %v1189_v28, 0.0  ;;  %2954 = vmatpush3.bf16.msra.mxu1 %v2953_v26 }
 0x1e3   : > { %1954 = vmatprep.mubr.f32.mxu0 %v1204_v57 }
 0x1e4   : > { %2024 = vmatprep.mubr.f32.mxu1 %v1206_v58  ;;  %1955 = vmatmul.mubr.f32.vlgmr.msra.gmra.mrb[14].mxu0 %v1203_v48 }
 0x1e5   : > { %2025 = vmatmul.mubr.f32.vlgmr.msra.gmra.mrb[14].mxu1 %v1205_v56 }
 0x257   : > { %v2195_v30 = vpop.f32.mrb[8].mxu0 }
 0x258   : > { %v2230_v22 = vpop.f32.mrb[8].mxu1  ;;  %v2196_v60 = vpop.f32.mrb[9].mxu0 }
 0x259   : > { %v2197_v52 = vadd.f32 %v2196_v60, %v2195_v30  ;;  %v2231_v61 = vpop.f32.mrb[9].mxu1 }
 0x25a   : > { %v2232_v53 = vadd.f32 %v2231_v61, %v2230_v22 }
 0x25b   : > { %v1537_v62 = vadd.f32 %v2197_v52, %v2158_v59 }
 0x25d   : > { %v1607_v63 = vadd.f32 %v2232_v53, %v1537_v62 }
 0x277   : > { %v2265_v1 = vpop.f32.mrb[10].mxu0 }
 0x278   : > { %v2300_v2 = vpop.f32.mrb[10].mxu1  ;;  %v2266_v3 = vpop.f32.mrb[11].mxu0 }
 0x279   : > { %v2267_v4 = vadd.f32 %v2266_v3, %v2265_v1  ;;  %v2301_v54 = vpop.f32.mrb[11].mxu1 }
 0x27a   : > { %v2302_v51 = vadd.f32 %v2301_v54, %v2300_v2 }
 0x27b   : > { %v1677_v5 = vadd.f32 %v2267_v4, %v1607_v63 }
 0x27d   : > { %v1747_v6 = vadd.f32 %v2302_v51, %v1677_v5 }
 0x297   : > { %v2335_v7 = vpop.f32.mrb[12].mxu0 }
 0x298   : > { %v2370_v8 = vpop.f32.mrb[12].mxu1  ;;  %v2336_v9 = vpop.f32.mrb[13].mxu0 }
 0x299   : > { %v2337_v10 = vadd.f32 %v2336_v9, %v2335_v7  ;;  %v2371_v11 = vpop.f32.mrb[13].mxu1 }
 0x29a   : > { %v2372_v12 = vadd.f32 %v2371_v11, %v2370_v8 }
 0x29b   : > { %v1817_v13 = vadd.f32 %v2337_v10, %v1747_v6 }
 0x29d   : > { %v1887_v14 = vadd.f32 %v2372_v12, %v1817_v13 }
 0x2b7   : > { %v2405_v15 = vpop.f32.mrb[14].mxu0 }
 0x2b8   : > { %v2440_v16 = vpop.f32.mrb[14].mxu1  ;;  %v2406_v17 = vpop.f32.mrb[15].mxu0 }
 0x2b9   : > { %v2407_v18 = vadd.f32 %v2406_v17, %v2405_v15  ;;  %v2441_v19 = vpop.f32.mrb[15].mxu1 }
 0x2ba   : > { %v2442_v20 = vadd.f32 %v2441_v19, %v2440_v16 }
 0x2bb   : > { %v1957_v23 = vadd.f32 %v2407_v18, %v1887_v14 }
 0x2bd   : > { %v2027_v24 = vadd.f32 %v2442_v20, %v1957_v23 }
 0x2bf   : > { %2030 = vst [vmem:[%s281_s13] sm:$0xff] %v2027_v24 }
 0x2c0   : > { %3163 = shalt.err (!%p3160_p4)
}
 0x2c1   : > { %s3164_s16 = scalar_lea.hbm %s3568_s8, 128  ;;  %s3168_s17 = scalar_lea.hbm %s3617_s5, 256 }
 0x2c2   : > { %p3165_p0 = scmp.ne.s32.totalorder %s3568_s8, %s3164_s16  ;;  %p3169_p8 = scmp.lt.u32.totalorder %s3568_s8, %s3617_s5 }
 0x2c3   : > { %p3170_p13 = scmp.lt.u32.totalorder %s3168_s17, %s3164_s16  ;;  %p3172_p10 = scmp.lt.u32.totalorder %s3164_s16, %s3568_s8 }
 0x2c4   : > { %p3166_p9 = pnand %p3165_p0, %p3412_p3 }
 0x2c5   : > { %p3171_p6 = por %p3170_p13, %p3169_p8 }
 0x2c6   : > { %p3167_p11 = pneg %p3166_p9 }
 0x2c7   : > { %p3173_p5 = por %p3172_p10, %p3171_p6 }
 0x2c9   : > { %p3174_p7 = pnand %p3173_p5, %p3167_p11 }
 0x2cb   : > { %3177 = shalt.err (!%p3174_p7)
}
 0x2cc   : > { %2969 = dma.vmem_to_hbm [thread:$0]  (%p3412_p3), %s3570_s15, 128, %s3568_s8, %s2032_s7  }
 0x2cd PF: > { %s2057_s11 = sand.u32 1, %s3212_s18   ;;  %p3635_p12 = scmp.ne.s32.totalorder %s3622_s25, 0 }
 0x2ce   : > { %p3636_p1 = scmp.ge.s32.totalorder %s3224_s21, 2  ;;  %s2058_s13 = scalar_lea.sflag [#allocation4], %s2057_s11 }
 0x2d0   : > { %p2986_p2 = pnand %p3636_p1, %p3635_p12 }
 0x2d2   : > { %3207 = dma.done.wait (!%p2986_p2), %s2058_s13, 128  }
 0x2d3   : > { %3209 = vsyncadd (!%p2986_p2), %s2058_s13, 4294967168  ;;  %p20_p4 = scmp.ge.s32.totalorder %s3399_s14, 4   ;;  %s3637_s18 = smov %s3216_s19 }
 0x2d4   : > { %s3638_s19 = smov %s3220_s20  ;;  %s3639_s20 = smov %s3408_s23 }
 0x2d5   : > { %s3640_s21 = smov %s3399_s14  ;;  %22 = sbr.rel (!%p20_p4) target bundleno = 7 (0x7), region = 97 }
 0x2dc   :  { %2063 = vsyncpa [#allocation3], 1 }
 0x2dd   :  { %2065 = vsyncpa [#allocation3 + $0x1], 1 }
 0x2de   :  { %2066 = vsyncpa [#allocation6], 1 }
 0x2df   :  { %2067 = vsyncpa [#allocation9], 1 }
 0x2e0   :  { %2068 = vsyncpa [#allocation4], 1 }
 0x2e1   :  { %2070 = vsyncpa [#allocation4 + $0x1], 1 }

</bundles_post_ra>
